<compile_context>
chip_gen: v6e
topology: v6e:2x2x1
jax: 0.10.0
libtpu: 0.0.40
codegen_flags: <defaults>
</compile_context>

<pallas_src>
import numpy as np
import jax
import jax.numpy as jnp
from jax import lax
from jax.experimental import pallas as pl
from jax.experimental.pallas import tpu as pltpu

BN_EPS = 1e-5
BN_SCALE = float(1.0 / np.sqrt(1.0 + BN_EPS))  # eval BN, running_mean=0, running_var=1

# DARTS-style cell architecture: 8 (op, input_index) pairs -> 4 intermediate nodes.
ARCH = [('skip_connect', 0), ('avg_pool_3x3', 1),
        ('max_pool_3x3', 0), ('skip_connect', 1),
        ('skip_connect', 2), ('avg_pool_3x3', 3),
        ('max_pool_3x3', 2), ('skip_connect', 4)]
CONCAT = range(2, 6)


# ---------------------------------------------------------------------------
# Fused Pallas kernel: preprocess matmuls + pools + node adds + channel concat
# ---------------------------------------------------------------------------
def make_cell_kernel(H, W, C):
    WC = W * C

    def kernel(s0_ref, s1_ref, w0_ref, w1_ref, o_ref):
        # s0_ref/s1_ref: (1, H, W*Cin) lane-dense input slab for one batch element.
        # w0_ref/w1_ref: (W*Cin, W*C) block-diagonal 1x1-conv weights (BN folded in).
        # o_ref:         (1, 4, H, W*C) -- the four concatenated node states.
        f32 = jnp.float32

        # Avg-pool divisor (count_include_pad=False) * BN eval scale, built in-kernel
        # from iota masks (no divisor tensor DMA). counts are {2,3} x {2,3}.
        row = lax.broadcasted_iota(jnp.int32, (H, WC), 0)
        lane = lax.broadcasted_iota(jnp.int32, (H, WC), 1)
        inv_r = jnp.where((row == 0) | (row == H - 1), 0.5, 1.0 / 3.0)
        inv_c = jnp.where((lane < C) | (lane >= (W - 1) * C), 0.5, 1.0 / 3.0)
        inv_cnt_bn = (inv_r * inv_c * f32(BN_SCALE)).astype(f32)

        def taps9(x, neutral):
            # Pad one pixel of `neutral` on each spatial side (W padding = C lanes),
            # then return the nine 3x3-window shifts as static slices.
            padc = jnp.full((H, C), neutral, f32)
            xp = jnp.concatenate([padc, x, padc], axis=1)          # (H, (W+2)*C)
            padr = jnp.full((1, WC + 2 * C), neutral, f32)
            xp = jnp.concatenate([padr, xp, padr], axis=0)         # (H+2, (W+2)*C)
            return [xp[di:di + H, dj * C:dj * C + WC]
                    for di in range(3) for dj in range(3)]

        def avg_pool_bn(x):   # AvgPool2d(3,1,1,count_include_pad=False) + eval BN
            ts = taps9(x, 0.0)
            acc = ts[0]
            for t in ts[1:]:
                acc = acc + t
            return acc * inv_cnt_bn

        def max_pool_bn(x):   # MaxPool2d(3,1,1) + eval BN
            ts = taps9(x, -jnp.inf)
            m = ts[0]
            for t in ts[1:]:
                m = jnp.maximum(m, t)
            return m * f32(BN_SCALE)

        def apply_op(name, h):
            if name == 'skip_connect':   # Identity (stride 1, non-reduction cell)
                return h
            if name == 'avg_pool_3x3':
                return avg_pool_bn(h)
            if name == 'max_pool_3x3':
                return max_pool_bn(h)
            if name == 'none':
                return jnp.zeros_like(h)
            raise NotImplementedError(name)

        # preprocess0 / preprocess1: ReLU -> 1x1 conv -> BN as one lane-dense matmul.
        s0 = jnp.dot(jnp.maximum(s0_ref[0], 0.0), w0_ref[...],
                     preferred_element_type=jnp.float32)            # (H, W*C)
        s1 = jnp.dot(jnp.maximum(s1_ref[0], 0.0), w1_ref[...],
                     preferred_element_type=jnp.float32)            # (H, W*C)

        states = [s0, s1]
        for i in range(len(ARCH) // 2):
            name1, idx1 = ARCH[2 * i]
            name2, idx2 = ARCH[2 * i + 1]
            states.append(apply_op(name1, states[idx1]) +
                          apply_op(name2, states[idx2]))            # node add, in VMEM

        # Channel concat folded into the output: group g holds state 2+g.
        for g, si in enumerate(CONCAT):
            o_ref[0, g] = states[si].astype(o_ref.dtype)

    return kernel


# ---------------------------------------------------------------------------
# Wrapper
# ---------------------------------------------------------------------------
def _block_diag_bn_weight(w, width):
    """Expand a (Cin, Cout) 1x1-conv weight to a (width*Cin, width*Cout)
    block-diagonal matrix with the eval-BN scale folded in, so the matmul output is
    already in the lane-dense (H, W*Cout) layout."""
    cin, cout = w.shape
    eye = jnp.eye(width, dtype=w.dtype)
    wb = jnp.einsum('uv,io->uivo', eye, w).reshape(width * cin, width * cout)
    return wb * jnp.asarray(BN_SCALE, w.dtype)


def cell_forward(s0_nchw, s1_nchw, params, drop_prob=0.0):
    """Cell.forward in eval mode. Inputs NCHW, output NCHW (channels = 4*C)."""
    del drop_prob  # eval mode: drop_path is not applied
    N, Cin0, H, W = s0_nchw.shape
    Cin1 = s1_nchw.shape[1]
    C = params['w0'].shape[1]

    # NCHW -> lane-dense (N, H, W*Cin) slabs (one XLA transpose per input).
    s0 = jnp.transpose(s0_nchw, (0, 2, 3, 1)).reshape(N, H, W * Cin0)
    s1 = jnp.transpose(s1_nchw, (0, 2, 3, 1)).reshape(N, H, W * Cin1)
    w0b = _block_diag_bn_weight(params['w0'], W)
    w1b = _block_diag_bn_weight(params['w1'], W)

    # Whole cell fused into ONE pallas_call; one grid step per batch element
    # ("parallel" so v7x's two TensorCores split the batch).
    # TODO(synk): for much larger H*W*C, add an H-tiling grid axis (1-row halo) and
    #             set vmem_limit_bytes so per-step blocks still fit v7x's 64 MiB VMEM.
    out = pl.pallas_call(
        make_cell_kernel(H, W, C),
        out_shape=jax.ShapeDtypeStruct((N, 4, H, W * C), s0_nchw.dtype),
        grid=(N,),
        in_specs=[
            pl.BlockSpec((1, H, W * Cin0), lambda n: (n, 0, 0)),
            pl.BlockSpec((1, H, W * Cin1), lambda n: (n, 0, 0)),
            pl.BlockSpec((W * Cin0, W * C), lambda n: (0, 0)),  # grid-invariant weight
            pl.BlockSpec((W * Cin1, W * C), lambda n: (0, 0)),  # (not re-fetched)
        ],
        out_specs=pl.BlockSpec((1, 4, H, W * C), lambda n: (n, 0, 0, 0)),
        compiler_params=pltpu.CompilerParams(dimension_semantics=("parallel",)),
    )(s0, s1, w0b, w1b)

    # (N, 4, H, W*C) -> (N, 4, H, W, C) -> NCHW (N, 4*C, H, W): single post-kernel
    # pass, kept only to match the PyTorch module's NCHW output layout.
    out = out.reshape(N, 4, H, W, C)
    return jnp.transpose(out, (0, 1, 4, 2, 3)).reshape(N, 4 * C, H, W)


# ---------------------------------------------------------------------------
# Pure-JAX reference (for correctness check)
# ---------------------------------------------------------------------------
def _ref_avgpool_bn(x):
    pad = [(0, 0), (1, 1), (1, 1), (0, 0)]
    s = lax.reduce_window(x, 0., lax.add, (1, 3, 3, 1), (1, 1, 1, 1), pad)
    c = lax.reduce_window(jnp.ones_like(x), 0., lax.add, (1, 3, 3, 1), (1, 1, 1, 1), pad)
    return (s / c) * BN_SCALE


def _ref_maxpool_bn(x):
    pad = [(0, 0), (1, 1), (1, 1), (0, 0)]
    m = lax.reduce_window(x, -jnp.inf, lax.max, (1, 3, 3, 1), (1, 1, 1, 1), pad)
    return m * BN_SCALE


def _ref_apply_op(name, h):
    if name == 'skip_connect':
        return h
    if name == 'avg_pool_3x3':
        return _ref_avgpool_bn(h)
    if name == 'max_pool_3x3':
        return _ref_maxpool_bn(h)
    return jnp.zeros_like(h)


def cell_forward_ref(s0_nchw, s1_nchw, params):
    s0 = jnp.transpose(s0_nchw, (0, 2, 3, 1))
    s1 = jnp.transpose(s1_nchw, (0, 2, 3, 1))
    s0 = jnp.einsum('nhwc,cd->nhwd', jnp.maximum(s0, 0.0), params['w0']) * BN_SCALE
    s1 = jnp.einsum('nhwc,cd->nhwd', jnp.maximum(s1, 0.0), params['w1']) * BN_SCALE
    states = [s0, s1]
    for i in range(len(ARCH) // 2):
        name1, idx1 = ARCH[2 * i]
        name2, idx2 = ARCH[2 * i + 1]
        states.append(_ref_apply_op(name1, states[idx1]) +
                      _ref_apply_op(name2, states[idx2]))
    out = jnp.concatenate([states[i] for i in CONCAT], axis=-1)
    return jnp.transpose(out, (0, 3, 1, 2))


# ---------------------------------------------------------------------------
if __name__ == "__main__":
    N, C_prev_prev, C_prev, C, H, W = 2, 8, 8, 16, 16, 16

    key = jax.random.PRNGKey(0)
    k0, k1, k2, k3 = jax.random.split(key, 4)
    # Inputs in PyTorch NCHW layout.
    s0 = jax.random.normal(k0, (N, C_prev_prev, H, W), dtype=jnp.float32)
    s1 = jax.random.normal(k1, (N, C_prev, H, W), dtype=jnp.float32)
    # Deterministic 1x1-conv weights: PyTorch conv weight (Cout, Cin, 1, 1) stored
    # here directly as the (Cin, Cout) matmul matrix.
    params = {
        'w0': 0.1 * jax.random.normal(k2, (C_prev_prev, C), dtype=jnp.float32),
        'w1': 0.1 * jax.random.normal(k3, (C_prev, C), dtype=jnp.float32),
    }

    fwd = jax.jit(cell_forward)
    out = jax.block_until_ready(fwd(s0, s1, params, drop_prob=0.2))
    assert out.shape == (N, 4 * C, H, W), out.shape

    ref = jax.block_until_ready(cell_forward_ref(s0, s1, params))
    np.testing.assert_allclose(np.asarray(out), np.asarray(ref), rtol=1e-2, atol=1e-2)

    print("KERNEL_OK")
</pallas_src>

<mosaic_0001>
module attributes {stable_mosaic.version = 11 : i64} {
  func.func @kernel(%arg0: i32, %arg1: memref<1x16x128xf32, #tpu.memory_space<vmem>>, %arg2: memref<1x16x128xf32, #tpu.memory_space<vmem>>, %arg3: memref<128x256xf32, #tpu.memory_space<vmem>>, %arg4: memref<128x256xf32, #tpu.memory_space<vmem>>, %arg5: memref<1x4x16x256xf32, #tpu.memory_space<vmem>>) attributes {dimension_semantics = [#tpu.dimension_semantics<parallel>], iteration_bounds = array<i64: 2>, scalar_prefetch = 0 : i64, scratch_operands = 0 : i64, tpu.core_type = #tpu.core_type<tc>, window_params = [{transform_indices = @transform_0, window_bounds = array<i64: 1, 16, 128>}, {transform_indices = @transform_1, window_bounds = array<i64: 1, 16, 128>}, {pipeline_mode = #tpu.pipeline_mode<synchronous>, transform_indices = @transform_2, window_bounds = array<i64: 128, 256>}, {pipeline_mode = #tpu.pipeline_mode<synchronous>, transform_indices = @transform_3, window_bounds = array<i64: 128, 256>}, {transform_indices = @transform_4, window_bounds = array<i64: 1, 4, 16, 256>}]} {
    %0 = tpu.iota {dimensions = array<i32: 0>} : vector<16x256xi32>
    %1 = tpu.iota {dimensions = array<i32: 1>} : vector<16x256xi32>
    %c0_i32 = arith.constant 0 : i32
    %2 = vector.broadcast %c0_i32 : i32 to vector<16x256xi32>
    %3 = arith.cmpi eq, %0, %2 : vector<16x256xi32>
    %c15_i32 = arith.constant 15 : i32
    %4 = vector.broadcast %c15_i32 : i32 to vector<16x256xi32>
    %5 = arith.cmpi eq, %0, %4 : vector<16x256xi32>
    %6 = arith.ori %3, %5 : vector<16x256xi1>
    %cst = arith.constant 5.000000e-01 : f32
    %cst_0 = arith.constant 0.333333343 : f32
    %7 = vector.broadcast %cst : f32 to vector<16x256xf32>
    %8 = vector.broadcast %cst_0 : f32 to vector<16x256xf32>
    %9 = arith.select %6, %7, %8 : vector<16x256xi1>, vector<16x256xf32>
    %c16_i32 = arith.constant 16 : i32
    %10 = vector.broadcast %c16_i32 : i32 to vector<16x256xi32>
    %11 = arith.cmpi slt, %1, %10 : vector<16x256xi32>
    %c240_i32 = arith.constant 240 : i32
    %12 = vector.broadcast %c240_i32 : i32 to vector<16x256xi32>
    %13 = arith.cmpi sge, %1, %12 : vector<16x256xi32>
    %14 = arith.ori %11, %13 : vector<16x256xi1>
    %cst_1 = arith.constant 5.000000e-01 : f32
    %cst_2 = arith.constant 0.333333343 : f32
    %15 = vector.broadcast %cst_1 : f32 to vector<16x256xf32>
    %16 = vector.broadcast %cst_2 : f32 to vector<16x256xf32>
    %17 = arith.select %14, %15, %16 : vector<16x256xi1>, vector<16x256xf32>
    %18 = arith.mulf %9, %17 : vector<16x256xf32>
    %cst_3 = arith.constant 0.999994993 : f32
    %19 = vector.broadcast %cst_3 : f32 to vector<16x256xf32>
    %20 = arith.mulf %18, %19 : vector<16x256xf32>
    %c0 = arith.constant 0 : index
    %c0_4 = arith.constant 0 : index
    %c0_5 = arith.constant 0 : index
    %21 = vector.load %arg1[%c0, %c0_4, %c0_5] : memref<1x16x128xf32, #tpu.memory_space<vmem>>, vector<1x16x128xf32>
    %22 = vector.shape_cast %21 : vector<1x16x128xf32> to vector<16x128xf32>
    %cst_6 = arith.constant 0.000000e+00 : f32
    %23 = vector.broadcast %cst_6 : f32 to vector<16x128xf32>
    %24 = arith.maximumf %22, %23 : vector<16x128xf32>
    %c0_7 = arith.constant 0 : index
    %c0_8 = arith.constant 0 : index
    %25 = vector.load %arg3[%c0_7, %c0_8] : memref<128x256xf32, #tpu.memory_space<vmem>>, vector<128x256xf32>
    %cst_9 = arith.constant dense<0.000000e+00> : vector<16x256xf32>
    %26 = tpu.matmul %24, %25, %cst_9 {dimension_numbers = #tpu.dot_dimension_numbers<[1], [0], [0], [1], [0, 0, 1, 1], [], []>} : vector<16x128xf32>, vector<128x256xf32>, vector<16x256xf32> -> vector<16x256xf32>
    %c0_10 = arith.constant 0 : index
    %c0_11 = arith.constant 0 : index
    %c0_12 = arith.constant 0 : index
    %27 = vector.load %arg2[%c0_10, %c0_11, %c0_12] : memref<1x16x128xf32, #tpu.memory_space<vmem>>, vector<1x16x128xf32>
    %28 = vector.shape_cast %27 : vector<1x16x128xf32> to vector<16x128xf32>
    %cst_13 = arith.constant 0.000000e+00 : f32
    %29 = vector.broadcast %cst_13 : f32 to vector<16x128xf32>
    %30 = arith.maximumf %28, %29 : vector<16x128xf32>
    %c0_14 = arith.constant 0 : index
    %c0_15 = arith.constant 0 : index
    %31 = vector.load %arg4[%c0_14, %c0_15] : memref<128x256xf32, #tpu.memory_space<vmem>>, vector<128x256xf32>
    %cst_16 = arith.constant dense<0.000000e+00> : vector<16x256xf32>
    %32 = tpu.matmul %30, %31, %cst_16 {dimension_numbers = #tpu.dot_dimension_numbers<[1], [0], [0], [1], [0, 0, 1, 1], [], []>} : vector<16x128xf32>, vector<128x256xf32>, vector<16x256xf32> -> vector<16x256xf32>
    %cst_17 = arith.constant 0.000000e+00 : f32
    %33 = vector.broadcast %cst_17 : f32 to vector<16x16xf32>
    %34 = tpu.concatenate %33, %32, %33 in 1 : vector<16x16xf32>, vector<16x256xf32>, vector<16x16xf32> -> vector<16x288xf32>
    %cst_18 = arith.constant 0.000000e+00 : f32
    %35 = vector.broadcast %cst_18 : f32 to vector<1x288xf32>
    %36 = tpu.concatenate %35, %34, %35 in 0 : vector<1x288xf32>, vector<16x288xf32>, vector<1x288xf32> -> vector<18x288xf32>
    %37 = vector.extract_strided_slice %36 {offsets = [0, 0], sizes = [16, 256], strides = [1, 1]} : vector<18x288xf32> to vector<16x256xf32>
    %38 = vector.extract_strided_slice %36 {offsets = [0, 16], sizes = [16, 256], strides = [1, 1]} : vector<18x288xf32> to vector<16x256xf32>
    %39 = vector.extract_strided_slice %36 {offsets = [0, 32], sizes = [16, 256], strides = [1, 1]} : vector<18x288xf32> to vector<16x256xf32>
    %40 = vector.extract_strided_slice %36 {offsets = [1, 0], sizes = [16, 256], strides = [1, 1]} : vector<18x288xf32> to vector<16x256xf32>
    %41 = vector.extract_strided_slice %36 {offsets = [1, 16], sizes = [16, 256], strides = [1, 1]} : vector<18x288xf32> to vector<16x256xf32>
    %42 = vector.extract_strided_slice %36 {offsets = [1, 32], sizes = [16, 256], strides = [1, 1]} : vector<18x288xf32> to vector<16x256xf32>
    %43 = vector.extract_strided_slice %36 {offsets = [2, 0], sizes = [16, 256], strides = [1, 1]} : vector<18x288xf32> to vector<16x256xf32>
    %44 = vector.extract_strided_slice %36 {offsets = [2, 16], sizes = [16, 256], strides = [1, 1]} : vector<18x288xf32> to vector<16x256xf32>
    %45 = vector.extract_strided_slice %36 {offsets = [2, 32], sizes = [16, 256], strides = [1, 1]} : vector<18x288xf32> to vector<16x256xf32>
    %46 = arith.addf %37, %38 : vector<16x256xf32>
    %47 = arith.addf %46, %39 : vector<16x256xf32>
    %48 = arith.addf %47, %40 : vector<16x256xf32>
    %49 = arith.addf %48, %41 : vector<16x256xf32>
    %50 = arith.addf %49, %42 : vector<16x256xf32>
    %51 = arith.addf %50, %43 : vector<16x256xf32>
    %52 = arith.addf %51, %44 : vector<16x256xf32>
    %53 = arith.addf %52, %45 : vector<16x256xf32>
    %54 = arith.mulf %53, %20 : vector<16x256xf32>
    %55 = arith.addf %26, %54 : vector<16x256xf32>
    %cst_19 = arith.constant 0xFF800000 : f32
    %56 = vector.broadcast %cst_19 : f32 to vector<16x16xf32>
    %57 = tpu.concatenate %56, %26, %56 in 1 : vector<16x16xf32>, vector<16x256xf32>, vector<16x16xf32> -> vector<16x288xf32>
    %cst_20 = arith.constant 0xFF800000 : f32
    %58 = vector.broadcast %cst_20 : f32 to vector<1x288xf32>
    %59 = tpu.concatenate %58, %57, %58 in 0 : vector<1x288xf32>, vector<16x288xf32>, vector<1x288xf32> -> vector<18x288xf32>
    %60 = vector.extract_strided_slice %59 {offsets = [0, 0], sizes = [16, 256], strides = [1, 1]} : vector<18x288xf32> to vector<16x256xf32>
    %61 = vector.extract_strided_slice %59 {offsets = [0, 16], sizes = [16, 256], strides = [1, 1]} : vector<18x288xf32> to vector<16x256xf32>
    %62 = vector.extract_strided_slice %59 {offsets = [0, 32], sizes = [16, 256], strides = [1, 1]} : vector<18x288xf32> to vector<16x256xf32>
    %63 = vector.extract_strided_slice %59 {offsets = [1, 0], sizes = [16, 256], strides = [1, 1]} : vector<18x288xf32> to vector<16x256xf32>
    %64 = vector.extract_strided_slice %59 {offsets = [1, 16], sizes = [16, 256], strides = [1, 1]} : vector<18x288xf32> to vector<16x256xf32>
    %65 = vector.extract_strided_slice %59 {offsets = [1, 32], sizes = [16, 256], strides = [1, 1]} : vector<18x288xf32> to vector<16x256xf32>
    %66 = vector.extract_strided_slice %59 {offsets = [2, 0], sizes = [16, 256], strides = [1, 1]} : vector<18x288xf32> to vector<16x256xf32>
    %67 = vector.extract_strided_slice %59 {offsets = [2, 16], sizes = [16, 256], strides = [1, 1]} : vector<18x288xf32> to vector<16x256xf32>
    %68 = vector.extract_strided_slice %59 {offsets = [2, 32], sizes = [16, 256], strides = [1, 1]} : vector<18x288xf32> to vector<16x256xf32>
    %69 = arith.maximumf %60, %61 : vector<16x256xf32>
    %70 = arith.maximumf %69, %62 : vector<16x256xf32>
    %71 = arith.maximumf %70, %63 : vector<16x256xf32>
    %72 = arith.maximumf %71, %64 : vector<16x256xf32>
    %73 = arith.maximumf %72, %65 : vector<16x256xf32>
    %74 = arith.maximumf %73, %66 : vector<16x256xf32>
    %75 = arith.maximumf %74, %67 : vector<16x256xf32>
    %76 = arith.maximumf %75, %68 : vector<16x256xf32>
    %cst_21 = arith.constant 0.999994993 : f32
    %77 = vector.broadcast %cst_21 : f32 to vector<16x256xf32>
    %78 = arith.mulf %76, %77 : vector<16x256xf32>
    %79 = arith.addf %78, %32 : vector<16x256xf32>
    %cst_22 = arith.constant 0.000000e+00 : f32
    %80 = vector.broadcast %cst_22 : f32 to vector<16x16xf32>
    %81 = tpu.concatenate %80, %79, %80 in 1 : vector<16x16xf32>, vector<16x256xf32>, vector<16x16xf32> -> vector<16x288xf32>
    %cst_23 = arith.constant 0.000000e+00 : f32
    %82 = vector.broadcast %cst_23 : f32 to vector<1x288xf32>
    %83 = tpu.concatenate %82, %81, %82 in 0 : vector<1x288xf32>, vector<16x288xf32>, vector<1x288xf32> -> vector<18x288xf32>
    %84 = vector.extract_strided_slice %83 {offsets = [0, 0], sizes = [16, 256], strides = [1, 1]} : vector<18x288xf32> to vector<16x256xf32>
    %85 = vector.extract_strided_slice %83 {offsets = [0, 16], sizes = [16, 256], strides = [1, 1]} : vector<18x288xf32> to vector<16x256xf32>
    %86 = vector.extract_strided_slice %83 {offsets = [0, 32], sizes = [16, 256], strides = [1, 1]} : vector<18x288xf32> to vector<16x256xf32>
    %87 = vector.extract_strided_slice %83 {offsets = [1, 0], sizes = [16, 256], strides = [1, 1]} : vector<18x288xf32> to vector<16x256xf32>
    %88 = vector.extract_strided_slice %83 {offsets = [1, 16], sizes = [16, 256], strides = [1, 1]} : vector<18x288xf32> to vector<16x256xf32>
    %89 = vector.extract_strided_slice %83 {offsets = [1, 32], sizes = [16, 256], strides = [1, 1]} : vector<18x288xf32> to vector<16x256xf32>
    %90 = vector.extract_strided_slice %83 {offsets = [2, 0], sizes = [16, 256], strides = [1, 1]} : vector<18x288xf32> to vector<16x256xf32>
    %91 = vector.extract_strided_slice %83 {offsets = [2, 16], sizes = [16, 256], strides = [1, 1]} : vector<18x288xf32> to vector<16x256xf32>
    %92 = vector.extract_strided_slice %83 {offsets = [2, 32], sizes = [16, 256], strides = [1, 1]} : vector<18x288xf32> to vector<16x256xf32>
    %93 = arith.addf %84, %85 : vector<16x256xf32>
    %94 = arith.addf %93, %86 : vector<16x256xf32>
    %95 = arith.addf %94, %87 : vector<16x256xf32>
    %96 = arith.addf %95, %88 : vector<16x256xf32>
    %97 = arith.addf %96, %89 : vector<16x256xf32>
    %98 = arith.addf %97, %90 : vector<16x256xf32>
    %99 = arith.addf %98, %91 : vector<16x256xf32>
    %100 = arith.addf %99, %92 : vector<16x256xf32>
    %101 = arith.mulf %100, %20 : vector<16x256xf32>
    %102 = arith.addf %55, %101 : vector<16x256xf32>
    %cst_24 = arith.constant 0xFF800000 : f32
    %103 = vector.broadcast %cst_24 : f32 to vector<16x16xf32>
    %104 = tpu.concatenate %103, %55, %103 in 1 : vector<16x16xf32>, vector<16x256xf32>, vector<16x16xf32> -> vector<16x288xf32>
    %cst_25 = arith.constant 0xFF800000 : f32
    %105 = vector.broadcast %cst_25 : f32 to vector<1x288xf32>
    %106 = tpu.concatenate %105, %104, %105 in 0 : vector<1x288xf32>, vector<16x288xf32>, vector<1x288xf32> -> vector<18x288xf32>
    %107 = vector.extract_strided_slice %106 {offsets = [0, 0], sizes = [16, 256], strides = [1, 1]} : vector<18x288xf32> to vector<16x256xf32>
    %108 = vector.extract_strided_slice %106 {offsets = [0, 16], sizes = [16, 256], strides = [1, 1]} : vector<18x288xf32> to vector<16x256xf32>
    %109 = vector.extract_strided_slice %106 {offsets = [0, 32], sizes = [16, 256], strides = [1, 1]} : vector<18x288xf32> to vector<16x256xf32>
    %110 = vector.extract_strided_slice %106 {offsets = [1, 0], sizes = [16, 256], strides = [1, 1]} : vector<18x288xf32> to vector<16x256xf32>
    %111 = vector.extract_strided_slice %106 {offsets = [1, 16], sizes = [16, 256], strides = [1, 1]} : vector<18x288xf32> to vector<16x256xf32>
    %112 = vector.extract_strided_slice %106 {offsets = [1, 32], sizes = [16, 256], strides = [1, 1]} : vector<18x288xf32> to vector<16x256xf32>
    %113 = vector.extract_strided_slice %106 {offsets = [2, 0], sizes = [16, 256], strides = [1, 1]} : vector<18x288xf32> to vector<16x256xf32>
    %114 = vector.extract_strided_slice %106 {offsets = [2, 16], sizes = [16, 256], strides = [1, 1]} : vector<18x288xf32> to vector<16x256xf32>
    %115 = vector.extract_strided_slice %106 {offsets = [2, 32], sizes = [16, 256], strides = [1, 1]} : vector<18x288xf32> to vector<16x256xf32>
    %116 = arith.maximumf %107, %108 : vector<16x256xf32>
    %117 = arith.maximumf %116, %109 : vector<16x256xf32>
    %118 = arith.maximumf %117, %110 : vector<16x256xf32>
    %119 = arith.maximumf %118, %111 : vector<16x256xf32>
    %120 = arith.maximumf %119, %112 : vector<16x256xf32>
    %121 = arith.maximumf %120, %113 : vector<16x256xf32>
    %122 = arith.maximumf %121, %114 : vector<16x256xf32>
    %123 = arith.maximumf %122, %115 : vector<16x256xf32>
    %cst_26 = arith.constant 0.999994993 : f32
    %124 = vector.broadcast %cst_26 : f32 to vector<16x256xf32>
    %125 = arith.mulf %123, %124 : vector<16x256xf32>
    %126 = arith.addf %125, %102 : vector<16x256xf32>
    %c0_27 = arith.constant 0 : index
    %c0_28 = arith.constant 0 : index
    %c0_29 = arith.constant 0 : index
    %c0_30 = arith.constant 0 : index
    %127 = vector.load %arg5[%c0_27, %c0_28, %c0_29, %c0_30] : memref<1x4x16x256xf32, #tpu.memory_space<vmem>>, vector<1x1x16x256xf32>
    %128 = vector.shape_cast %127 : vector<1x1x16x256xf32> to vector<16x256xf32>
    %129 = vector.shape_cast %55 : vector<16x256xf32> to vector<1x1x16x256xf32>
    tpu.vector_store %arg5[%c0_27, %c0_28, %c0_29, %c0_30], %129 {strides = array<i32>} : memref<1x4x16x256xf32, #tpu.memory_space<vmem>>, vector<1x1x16x256xf32>,
    %c0_31 = arith.constant 0 : index
    %c1 = arith.constant 1 : index
    %c0_32 = arith.constant 0 : index
    %c0_33 = arith.constant 0 : index
    %130 = vector.load %arg5[%c0_31, %c1, %c0_32, %c0_33] : memref<1x4x16x256xf32, #tpu.memory_space<vmem>>, vector<1x1x16x256xf32>
    %131 = vector.shape_cast %130 : vector<1x1x16x256xf32> to vector<16x256xf32>
    %132 = vector.shape_cast %79 : vector<16x256xf32> to vector<1x1x16x256xf32>
    tpu.vector_store %arg5[%c0_31, %c1, %c0_32, %c0_33], %132 {strides = array<i32>} : memref<1x4x16x256xf32, #tpu.memory_space<vmem>>, vector<1x1x16x256xf32>,
    %c0_34 = arith.constant 0 : index
    %c2 = arith.constant 2 : index
    %c0_35 = arith.constant 0 : index
    %c0_36 = arith.constant 0 : index
    %133 = vector.load %arg5[%c0_34, %c2, %c0_35, %c0_36] : memref<1x4x16x256xf32, #tpu.memory_space<vmem>>, vector<1x1x16x256xf32>
    %134 = vector.shape_cast %133 : vector<1x1x16x256xf32> to vector<16x256xf32>
    %135 = vector.shape_cast %102 : vector<16x256xf32> to vector<1x1x16x256xf32>
    tpu.vector_store %arg5[%c0_34, %c2, %c0_35, %c0_36], %135 {strides = array<i32>} : memref<1x4x16x256xf32, #tpu.memory_space<vmem>>, vector<1x1x16x256xf32>,
    %c0_37 = arith.constant 0 : index
    %c3 = arith.constant 3 : index
    %c0_38 = arith.constant 0 : index
    %c0_39 = arith.constant 0 : index
    %136 = vector.load %arg5[%c0_37, %c3, %c0_38, %c0_39] : memref<1x4x16x256xf32, #tpu.memory_space<vmem>>, vector<1x1x16x256xf32>
    %137 = vector.shape_cast %136 : vector<1x1x16x256xf32> to vector<16x256xf32>
    %138 = vector.shape_cast %126 : vector<16x256xf32> to vector<1x1x16x256xf32>
    tpu.vector_store %arg5[%c0_37, %c3, %c0_38, %c0_39], %138 {strides = array<i32>} : memref<1x4x16x256xf32, #tpu.memory_space<vmem>>, vector<1x1x16x256xf32>,
    return
  }
  func.func @transform_0(%arg0: i32) -> (i32, i32, i32) {
    %c0_i32 = arith.constant 0 : i32
    %c0_i32_0 = arith.constant 0 : i32
    %c0_i32_1 = arith.constant 0 : i32
    return %arg0, %c0_i32, %c0_i32_0 : i32, i32, i32
  }
  func.func @transform_1(%arg0: i32) -> (i32, i32, i32) {
    %c0_i32 = arith.constant 0 : i32
    %c0_i32_0 = arith.constant 0 : i32
    %c0_i32_1 = arith.constant 0 : i32
    return %arg0, %c0_i32, %c0_i32_0 : i32, i32, i32
  }
  func.func @transform_2(%arg0: i32) -> (i32, i32) {
    %c0_i32 = arith.constant 0 : i32
    %c0_i32_0 = arith.constant 0 : i32
    %c0_i32_1 = arith.constant 0 : i32
    return %c0_i32, %c0_i32_0 : i32, i32
  }
  func.func @transform_3(%arg0: i32) -> (i32, i32) {
    %c0_i32 = arith.constant 0 : i32
    %c0_i32_0 = arith.constant 0 : i32
    %c0_i32_1 = arith.constant 0 : i32
    return %c0_i32, %c0_i32_0 : i32, i32
  }
  func.func @transform_4(%arg0: i32) -> (i32, i32, i32, i32) {
    %c0_i32 = arith.constant 0 : i32
    %c0_i32_0 = arith.constant 0 : i32
    %c0_i32_1 = arith.constant 0 : i32
    %c0_i32_2 = arith.constant 0 : i32
    return %arg0, %c0_i32, %c0_i32_0, %c0_i32_1 : i32, i32, i32, i32
  }
}

</mosaic_0001>

<bundles_post_ra>
// kernel: cell_forward.1
= control target key start
LH: loop header
LB: loop body
LE: loop exit
PB: predicated region body
PF: predicated region fallthrough
CT: control target
= control target key end

     0   :  { %s1657_s15 = smov 0   ;;  %s2843_s0 = inlined_call_operand.vmem [shape: f32[2,16,128], index: 0, kind: input, shape index: {}]   ;;  %s2844_s1 = inlined_call_operand.vmem [shape: f32[2,16,128], index: 1, kind: input, shape index: {}]   ;;  %s2845_s2 = inlined_call_operand.vmem [shape: f32[128,256], index: 2, kind: input, shape index: {}]   ;;  %s2846_s3 = inlined_call_operand.vmem [shape: f32[128,256], index: 3, kind: input, shape index: {}]   ;;  %s2847_s4 = inlined_call_operand.vmem [shape: f32[2,4,16,256], index: 4, kind: output, shape index: {}]  }
   0x1 LB: > { %s1578_s16 = sadd.s32 4294967295, %s1625_s15   ;;  %p1582_p0 = scmp.ge.s32.totalorder %s1625_s15, 1  ;;  %s1625_s15 = sphi %s1657_s15, %s14_s15  }
   0x2   : > { %p172_p1 = scmp.lt.s32.totalorder %s1625_s15, 3 }
   0x4   : > { %p173_p2 = pnand %p1582_p0, %p172_p1 }
   0x6   : > { %176 = sbr.rel (%p173_p2) target bundleno = 1006 (0x3ee), region = 36 }
   0xb   : > { %v283_v0 = vld [vmem:[%s2845_s2 + $0xf8] sm:$0xff]  ;;  %v282_v2 = vld [vmem:[%s2845_s2 + $0xf0] sm:$0xff]  ;;  %v281_v4 = vld [vmem:[%s2845_s2 + $0xe8] sm:$0xff]  ;;  %p1763_p3 = scmp.lt.s32.totalorder %s1578_s16, 1  ;;  %s1628_s8 = smov 16   ;;  %vm486_vm0 = vcmask 130048  }
   0xc   : > { %v396_v1 = vld [vmem:[%s2846_s3 + $0xf8] sm:$0xff]  ;;  %284 = vmatprep.subr.mxu0 %v283_v0  ;;  %v395_v3 = vld [vmem:[%s2846_s3 + $0xf0] sm:$0xff]  ;;  %v394_v5 = vld [vmem:[%s2846_s3 + $0xe8] sm:$0xff]  ;;  %vm501_vm1 = vcmask 1040384   ;;  %s1630_s9 = smov 96   ;;  %vm653_vm2 = vcmask 1045504  }
   0xd   : > { %397 = vmatprep.subr.mxu1 %v396_v1  ;;  %285 = vmatpush1.msra.mxu0 %v282_v2  ;;  %v280_v6 = vld [vmem:[%s2845_s2 + $0xe0] sm:$0xff]  ;;  %v279_v8 = vld [vmem:[%s2845_s2 + $0xd8] sm:$0xff]  ;;  %v278_v10 = vld [vmem:[%s2845_s2 + $0xd0] sm:$0xff]  ;;  %s2919_s16 = smov (!%p1763_p3, %s1578_s16), 1  ;;  %vm580_vm3 = vcmask 1046528   ;;  %vm540_vm4 = vcmask 916480  }
   0xe   : > { %398 = vmatpush1.msra.mxu1 %v395_v3  ;;  %v393_v7 = vld [vmem:[%s2846_s3 + $0xe0] sm:$0xff]  ;;  %286 = vmatprep.subr.mxu0 %v281_v4  ;;  %v392_v9 = vld [vmem:[%s2846_s3 + $0xd8] sm:$0xff]  ;;  %v391_v11 = vld [vmem:[%s2846_s3 + $0xd0] sm:$0xff]  ;;  %s1603_s18 = sshll.u32 %s2919_s16, 4  ;;  %vm565_vm5 = vcmask 785408  }
   0xf   : > { %399 = vmatprep.subr.mxu1 %v394_v5  ;;  %287 = vmatpush1.msra.mxu0 %v280_v6  ;;  %v277_v12 = vld [vmem:[%s2845_s2 + $0xc8] sm:$0xff]  ;;  %v276_v14 = vld [vmem:[%s2845_s2 + $0xc0] sm:$0xff]  ;;  %v275_v16 = vld [vmem:[%s2845_s2 + $0xb8] sm:$0xff]  ;;  %s1843_s7 = scalar_lea.vmem %s2843_s0, %s1603_s18  ;;  %s212_s10 = scalar_lea.vmem %s2844_s1, %s1603_s18  ;;  %v1627_v6 = vmov 0.0  }
  0x10   : > { %400 = vmatpush1.msra.mxu1 %v393_v7  ;;  %v390_v13 = vld [vmem:[%s2846_s3 + $0xc8] sm:$0xff]  ;;  %288 = vmatprep.subr.mxu0 %v279_v8  ;;  %v389_v15 = vld [vmem:[%s2846_s3 + $0xc0] sm:$0xff]  ;;  %v388_v17 = vld [vmem:[%s2846_s3 + $0xb8] sm:$0xff] }
  0x11   : > { %401 = vmatprep.subr.mxu1 %v392_v9  ;;  %289 = vmatpush1.msra.mxu0 %v278_v10  ;;  %v274_v18 = vld [vmem:[%s2845_s2 + $0xb0] sm:$0xff]  ;;  %v273_v20 = vld [vmem:[%s2845_s2 + $0xa8] sm:$0xff]  ;;  %v272_v22 = vld [vmem:[%s2845_s2 + $0xa0] sm:$0xff] }
  0x12   : > { %402 = vmatpush1.msra.mxu1 %v391_v11  ;;  %290 = vmatprep.subr.mxu0 %v277_v12  ;;  %v387_v19 = vld [vmem:[%s2846_s3 + $0xb0] sm:$0xff]  ;;  %v386_v21 = vld [vmem:[%s2846_s3 + $0xa8] sm:$0xff]  ;;  %v385_v23 = vld [vmem:[%s2846_s3 + $0xa0] sm:$0xff] }
  0x13   : > { %403 = vmatprep.subr.mxu1 %v390_v13  ;;  %291 = vmatpush1.msra.mxu0 %v276_v14  ;;  %v271_v24 = vld [vmem:[%s2845_s2 + $0x98] sm:$0xff]  ;;  %v270_v26 = vld [vmem:[%s2845_s2 + $0x90] sm:$0xff]  ;;  %v269_v28 = vld [vmem:[%s2845_s2 + $0x88] sm:$0xff] }
  0x14   : > { %404 = vmatpush1.msra.mxu1 %v389_v15  ;;  %292 = vmatprep.subr.mxu0 %v275_v16  ;;  %v384_v25 = vld [vmem:[%s2846_s3 + $0x98] sm:$0xff]  ;;  %v383_v27 = vld [vmem:[%s2846_s3 + $0x90] sm:$0xff]  ;;  %v382_v29 = vld [vmem:[%s2846_s3 + $0x88] sm:$0xff] }
  0x15   : > { %405 = vmatprep.subr.mxu1 %v388_v17  ;;  %293 = vmatpush1.msra.mxu0 %v274_v18  ;;  %v268_v30 = vld [vmem:[%s2845_s2 + $0x80] sm:$0xff]  ;;  %v267_v32 = vld [vmem:[%s2845_s2 + $0x78] sm:$0xff]  ;;  %v266_v34 = vld [vmem:[%s2845_s2 + $0x70] sm:$0xff] }
  0x16   : > { %406 = vmatpush1.msra.mxu1 %v387_v19  ;;  %294 = vmatprep.subr.mxu0 %v273_v20  ;;  %v381_v31 = vld [vmem:[%s2846_s3 + $0x80] sm:$0xff]  ;;  %v380_v33 = vld [vmem:[%s2846_s3 + $0x78] sm:$0xff]  ;;  %v379_v35 = vld [vmem:[%s2846_s3 + $0x70] sm:$0xff] }
  0x17   : > { %407 = vmatprep.subr.mxu1 %v386_v21  ;;  %295 = vmatpush1.msra.mxu0 %v272_v22  ;;  %v265_v36 = vld [vmem:[%s2845_s2 + $0x68] sm:$0xff]  ;;  %v264_v38 = vld [vmem:[%s2845_s2 + $0x60] sm:$0xff]  ;;  %v263_v40 = vld [vmem:[%s2845_s2 + $0x58] sm:$0xff] }
  0x18   : > { %408 = vmatpush1.msra.mxu1 %v385_v23  ;;  %296 = vmatprep.subr.mxu0 %v271_v24  ;;  %v378_v37 = vld [vmem:[%s2846_s3 + $0x68] sm:$0xff]  ;;  %v377_v39 = vld [vmem:[%s2846_s3 + $0x60] sm:$0xff]  ;;  %v376_v41 = vld [vmem:[%s2846_s3 + $0x58] sm:$0xff] }
  0x19   : > { %409 = vmatprep.subr.mxu1 %v384_v25  ;;  %297 = vmatpush1.msra.mxu0 %v270_v26  ;;  %v262_v42 = vld [vmem:[%s2845_s2 + $0x50] sm:$0xff]  ;;  %v261_v44 = vld [vmem:[%s2845_s2 + $0x48] sm:$0xff]  ;;  %v260_v46 = vld [vmem:[%s2845_s2 + $0x40] sm:$0xff] }
  0x1a   : > { %410 = vmatpush1.msra.mxu1 %v383_v27  ;;  %298 = vmatprep.subr.mxu0 %v269_v28  ;;  %v375_v43 = vld [vmem:[%s2846_s3 + $0x50] sm:$0xff]  ;;  %v374_v45 = vld [vmem:[%s2846_s3 + $0x48] sm:$0xff]  ;;  %v373_v47 = vld [vmem:[%s2846_s3 + $0x40] sm:$0xff] }
  0x1b   : > { %411 = vmatprep.subr.mxu1 %v382_v29  ;;  %299 = vmatpush1.msra.mxu0 %v268_v30  ;;  %v259_v48 = vld [vmem:[%s2845_s2 + $0x38] sm:$0xff]  ;;  %v258_v50 = vld [vmem:[%s2845_s2 + $0x30] sm:$0xff]  ;;  %v257_v52 = vld [vmem:[%s2845_s2 + $0x28] sm:$0xff] }
  0x1c   : > { %412 = vmatpush1.msra.mxu1 %v381_v31  ;;  %300 = vmatprep.subr.mxu0 %v267_v32  ;;  %v372_v49 = vld [vmem:[%s2846_s3 + $0x38] sm:$0xff]  ;;  %v371_v51 = vld [vmem:[%s2846_s3 + $0x30] sm:$0xff]  ;;  %v370_v53 = vld [vmem:[%s2846_s3 + $0x28] sm:$0xff] }
  0x1d   : > { %413 = vmatprep.subr.mxu1 %v380_v33  ;;  %301 = vmatpush1.msra.mxu0 %v266_v34  ;;  %v256_v54 = vld [vmem:[%s2845_s2 + $0x20] sm:$0xff]  ;;  %v255_v56 = vld [vmem:[%s2845_s2 + $0x18] sm:$0xff]  ;;  %v254_v58 = vld [vmem:[%s2845_s2 + $0x10] sm:$0xff] }
  0x1e   : > { %414 = vmatpush1.msra.mxu1 %v379_v35  ;;  %302 = vmatprep.subr.mxu0 %v265_v36  ;;  %v369_v55 = vld [vmem:[%s2846_s3 + $0x20] sm:$0xff]  ;;  %v368_v57 = vld [vmem:[%s2846_s3 + $0x18] sm:$0xff]  ;;  %v367_v59 = vld [vmem:[%s2846_s3 + $0x10] sm:$0xff] }
  0x1f   : > { %415 = vmatprep.subr.mxu1 %v378_v37  ;;  %303 = vmatpush1.msra.mxu0 %v264_v38  ;;  %v248_v60 = vld [vmem:[%s1843_s7] sm:$0xff]  ;;  %v253_v62 = vld [vmem:[%s2845_s2 + $0x8] sm:$0xff] }
  0x20   : > { %416 = vmatpush1.msra.mxu1 %v377_v39  ;;  %304 = vmatprep.subr.mxu0 %v263_v40  ;;  %v361_v61 = vld [vmem:[%s212_s10] sm:$0xff]  ;;  %v366_v63 = vld [vmem:[%s2846_s3 + $0x8] sm:$0xff]  ;;  %v250_v2 = vmax.f32 %v248_v60, 0.0 }
  0x21   : > { %417 = vmatprep.subr.mxu1 %v376_v41  ;;  %305 = vmatpush1.msra.mxu0 %v262_v42  ;;  %v252_v0 = vld [vmem:[%s2845_s2] sm:$0xff]  ;;  %v363_v3 = vmax.f32 %v361_v61, 0.0  ;;  %v362_v4 = vld [vmem:[%s212_s10 + $0x8] sm:$0xff]  ;;  %s1605_s10 = sshll.u32 %s2919_s16, 7 }
  0x22   : > { %418 = vmatpush1.msra.mxu1 %v375_v43  ;;  %306 = vmatprep.subr.mxu0 %v261_v44  ;;  %v365_v1 = vld [vmem:[%s2846_s3] sm:$0xff]  ;;  %v249_v5 = vld [vmem:[%s1843_s7 + $0x8] sm:$0xff]  ;;  %v364_v7 = vmax.f32 %v362_v4, 0.0  ;;  %s1629_s7 = smov 112   ;;  %s2310_s16 = scalar_lea.vmem %s2847_s4, %s1605_s10 }
  0x23   : > { %419 = vmatprep.subr.mxu1 %v374_v45  ;;  %307 = vmatpush1.msra.mxu0 %v260_v46  ;;  %v251_v8 = vmax.f32 %v249_v5, 0.0 }
  0x24   : > { %420 = vmatpush1.msra.mxu1 %v373_v47  ;;  %308 = vmatprep.subr.mxu0 %v259_v48 }
  0x25   : > { %421 = vmatprep.subr.mxu1 %v372_v49  ;;  %309 = vmatpush1.msra.mxu0 %v258_v50 }
  0x26   : > { %422 = vmatpush1.msra.mxu1 %v371_v51  ;;  %310 = vmatprep.subr.mxu0 %v257_v52 }
  0x27   : > { %423 = vmatprep.subr.mxu1 %v370_v53  ;;  %311 = vmatpush1.msra.mxu0 %v256_v54 }
  0x28   : > { %424 = vmatpush1.msra.mxu1 %v369_v55  ;;  %312 = vmatprep.subr.mxu0 %v255_v56 }
  0x29   : > { %425 = vmatprep.subr.mxu1 %v368_v57  ;;  %313 = vmatpush1.msra.mxu0 %v254_v58 }
  0x2a   : > { %426 = vmatpush1.msra.mxu1 %v367_v59  ;;  %314 = vmatprep.subr.mxu0 %v253_v62 }
  0x2b   : > { %427 = vmatprep.subr.mxu1 %v366_v63  ;;  %315 = vmatpush1.msra.mxu0 %v252_v0 }
  0x2c   : > { %348 = vmatprep.mubr.f32.mxu0 %v1627_v6  ;;  %428 = vmatpush1.msra.mxu1 %v365_v1 }
  0x2d   : > { %461 = vmatprep.mubr.f32.mxu1 %v1627_v6  ;;  %349 = vmatmul.mubr.f32.vlgmr.msra.gmra.mxu0 %v250_v2 }
  0x2e   : > { %462 = vmatmul.mubr.f32.vlgmr.msra.gmra.mxu1 %v363_v3  ;;  %354 = vmatprep.mubr.f32.mxu0 %v1627_v6 }
  0x2f   : > { %467 = vmatprep.mubr.f32.mxu1 %v1627_v6 }
  0x31   : > { %355 = vmatmul.mubr.f32.gmra.mxu0 %v251_v8 }
  0x32   : > { %468 = vmatmul.mubr.f32.gmra.mxu1 %v364_v7 }
  0xed   : > { %v1880_v9 = vpop.f32.mrf.mxu0 }
  0xee   : > { %v1882_v10 = vpop.f32.mrf.mxu1 }
  0xef   : > { %2864 = vst [vmem:[#allocation2_spill] sm:$0xff] %v1882_v10  ;;  %478 = vrot.lane.b32.xlu0 %v1882_v10, %s1628_s8  ;;  %v1886_v11 = vpop.f32.mrf.mxu0 }
  0xf0   : > { %v1888_v12 = vpop.f32.mrf.mxu1  ;;  %739 = vrot.lane.b32.xlu1 %v1886_v11, %s1628_s8 }
  0xf1   : > { %2865 = vst [vmem:[#allocation3_spill] sm:$0xff] %v1888_v12  ;;  %v1900_v15 = vpop.f32.mrf.mxu0 }
  0xf2   : > { %v1892_v13 = vpop.f32.mrf.mxu1 }
  0xf3   : > { %2866 = vst [vmem:[#allocation4_spill] sm:$0xff] %v1892_v13  ;;  %737 = vrot.lane.b32.xlu0 %v1880_v9, %s1628_s8  ;;  %v1906_v16 = vpop.f32.mrf.mxu0 }
  0xf4   : > { %482 = vrot.lane.b32.xlu1 %v1892_v13, %s1628_s8  ;;  %v1898_v14 = vpop.f32.mrf.mxu1 }
  0xf5   : > { %2867 = vst [vmem:[#allocation5_spill] sm:$0xff] %v1898_v14 }
  0xf7   : > { %480 = vrot.lane.b32.xlu0 %v1888_v12, %s1628_s8 }
  0xf8   : > { %484 = vrot.lane.b32.xlu1 %v1898_v14, %s1628_s8 }
  0xfb   : > { %741 = vrot.lane.b32.xlu0 %v1900_v15, %s1628_s8 }
  0xfc   : > { %743 = vrot.lane.b32.xlu1 %v1906_v16, %s1628_s8 }
 0x161   : > { %v479_v17 = vpop.permute.xlu0 %478 }
 0x162   : > { %v493_v18 = vsel %vm486_vm0, 0.0, %v479_v17  ;;  %v740_v20 = vpop.permute.xlu1 %739 }
 0x163   : > { %v502_v19 = vrot.slane %v493_v18, 7  ;;  %v753_v37 = vsel %vm486_vm0, %v740_v20, -inf }
 0x164   : > { %v761_v39 = vrot.slane %v753_v37, 7 }
 0x165   : > { %v738_v21 = vpop.permute.xlu0 %737  ;;  %v1914_v22 = vsel %vm501_vm1, 0.0, %v502_v19 }
 0x166   : > { %v751_v23 = vsel %vm486_vm0, -inf, %v738_v21  ;;  %528 = vrot.lane.b32.xlu0 %v1914_v22, %s1629_s7  ;;  %v483_v24 = vpop.permute.xlu1 %482  ;;  %v745_v32 = vsel %vm486_vm0, %v738_v21, %v740_v20  ;;  %v1952_v45 = vsel %vm501_vm1, -inf, %v761_v39  ;;  %v581_v4 = vrot.slane %v1914_v22, 1 }
 0x167   : > { %v759_v25 = vrot.slane %v751_v23, 7  ;;  %v760_v35 = vrot.slane %v745_v32, 7  ;;  %v494_v43 = vsel %vm486_vm0, 0.0, %v483_v24  ;;  %v925_v49 = vrot.slane %v1952_v45, 2 }
 0x168   : > { %v505_v44 = vrot.slane %v494_v43, 7 }
 0x169   : > { %v481_v26 = vpop.permute.xlu0 %480  ;;  %v1923_v30 = vsel %vm501_vm1, -inf, %v759_v25  ;;  %v1944_v42 = vsel %vm501_vm1, -inf, %v760_v35 }
 0x16a   : > { %v487_v27 = vsel %vm486_vm0, %v479_v17, %v481_v26  ;;  %553 = vrot.lane.b32.xlu0 %v1914_v22, %s1630_s9  ;;  %v485_v29 = vpop.permute.xlu1 %484  ;;  %2868 = vst [vmem:[#allocation6_spill] sm:$0xff] %v1923_v30  ;;  %v495_v33 = vsel %vm486_vm0, %v481_v26, 0.0  ;;  %2869 = vst [vmem:[#allocation7_spill] sm:$0xff] %v1944_v42  ;;  %v1967_v51 = vsel %vm501_vm1, %v502_v19, %v505_v44  ;;  %v522_v6 = vsel %vm501_vm1, %v505_v44, 0.0 }
 0x16b   : > { %v503_v28 = vrot.slane %v487_v27, 7  ;;  %v504_v36 = vrot.slane %v495_v33, 7  ;;  %v1971_v53 = vsel %vm486_vm0, %v483_v24, %v485_v29  ;;  %v1996_v61 = vsel %vm486_vm0, %v485_v29, 0.0 }
 0x16c   : > { %v507_v57 = vrot.slane %v1971_v53, 7  ;;  %v509_v63 = vrot.slane %v1996_v61, 7  ;;  %v582_v3 = vrot.slane %v1967_v51, 1  ;;  %v587_v7 = vrot.slane %v522_v6, 1 }
 0x16d   : > { %v1926_v31 = vsel %vm501_vm1, 0.0, %v503_v28  ;;  %v1941_v41 = vsel %vm501_vm1, 0.0, %v504_v36  ;;  %v742_v48 = vpop.permute.xlu0 %741  ;;  %v655_v8 = vrot.slane %v1967_v51, 2  ;;  %v654_v17 = vrot.slane %v1914_v22, 2 }
 0x16e   : > { %785 = vrot.lane.b32.xlu0 %v1923_v30, %s1629_s7  ;;  %530 = vrot.lane.b32.xlu1 %v1926_v31, %s1629_s7  ;;  %v744_v34 = vpop.permute.xlu1 %743  ;;  %v752_v54 = vsel %vm486_vm0, -inf, %v742_v48  ;;  %v1990_v59 = vsel %vm501_vm1, %v503_v28, %v507_v57  ;;  %v2012_v1 = vsel %vm501_vm1, %v504_v36, %v509_v63  ;;  %v2030_v5 = vsel %vm580_vm3, %v581_v4, %v582_v3 }
 0x16f   : > { %v754_v38 = vsel %vm486_vm0, %v744_v34, -inf  ;;  %v762_v58 = vrot.slane %v752_v54, 7  ;;  %v1999_v62 = vsel %vm486_vm0, %v742_v48, %v744_v34  ;;  %v2044_v18 = vsel %vm580_vm3, %v582_v3, %v587_v7 }
 0x170   : > { %v766_v40 = vrot.slane %v754_v38, 7  ;;  %v764_v0 = vrot.slane %v1999_v62, 7  ;;  %v2047_v19 = vsel %vm653_vm2, %v654_v17, %v655_v8  ;;  %v660_v20 = vrot.slane %v522_v6, 2 }
 0x171   : > { %v1993_v60 = vsel %vm501_vm1, %v759_v25, %v762_v58  ;;  %v835_v23 = vrot.slane %v1923_v30, 1  ;;  %v779_v26 = vsel %vm501_vm1, %v762_v58, -inf  ;;  %v907_v29 = vrot.slane %v1923_v30, 2 }
 0x172   : > { %809 = vrot.lane.b32.xlu0 %v1923_v30, %s1630_s9  ;;  %555 = vrot.lane.b32.xlu1 %v1926_v31, %s1630_s9  ;;  %v1955_v46 = vsel %vm501_vm1, %v761_v39, %v766_v40  ;;  %v1958_v47 = vsel %vm501_vm1, %v766_v40, -inf  ;;  %v2017_v2 = vsel %vm501_vm1, %v760_v35, %v764_v0  ;;  %v836_v21 = vrot.slane %v1993_v60, 1 }
 0x173   : > { %v926_v50 = vrot.slane %v1955_v46, 2  ;;  %v928_v52 = vrot.slane %v1958_v47, 2  ;;  %2870 = vst [vmem:[#allocation8_spill] sm:$0xff] %v2017_v2  ;;  %v2060_v24 = vsel %vm653_vm2, %v655_v8, %v660_v20  ;;  %v841_v27 = vrot.slane %v779_v26, 1 }
 0x174   : > { %v2063_v25 = vsel %vm580_vm3, %v835_v23, %v836_v21  ;;  %v908_v28 = vrot.slane %v1993_v60, 2  ;;  %v913_v34 = vrot.slane %v779_v26, 2  ;;  %v601_v35 = vrot.slane %v2012_v1, 1 }
 0x175   : > { %v1979_v55 = vsel %vm653_vm2, %v925_v49, %v926_v50  ;;  %v1982_v56 = vsel %vm653_vm2, %v926_v50, %v928_v52  ;;  %2871 = vst [vmem:[#allocation9_spill] sm:$0xff] %v2063_v25  ;;  %v2077_v32 = vsel %vm580_vm3, %v836_v21, %v841_v27  ;;  %v523_v36 = vsel %vm501_vm1, %v507_v57, 0.0 }
 0x176   : > { %532 = vrot.lane.b32.xlu0 %v1941_v41, %s1629_s7  ;;  %787 = vrot.lane.b32.xlu1 %v1944_v42, %s1629_s7  ;;  %2872 = vst [vmem:[#allocation10_spill] sm:$0xff] %v2077_v32  ;;  %v2080_v33 = vsel %vm653_vm2, %v907_v29, %v908_v28  ;;  %v600_v37 = vrot.slane %v1941_v41, 1  ;;  %v2094_v38 = vsel %vm653_vm2, %v908_v28, %v913_v34  ;;  %v585_v40 = vrot.slane %v1990_v59, 1 }
 0x177   : > { %2873 = vst [vmem:[#allocation11_spill] sm:$0xff] %v2080_v33  ;;  %2874 = vst [vmem:[#allocation12_spill] sm:$0xff] %v2094_v38  ;;  %v589_v43 = vrot.slane %v523_v36, 1  ;;  %v524_v48 = vsel %vm501_vm1, %v509_v63, 0.0  ;;  %v584_v49 = vrot.slane %v1926_v31, 1  ;;  %v673_v54 = vrot.slane %v2012_v1, 2 }
 0x178   : > { %v602_v39 = vsel %vm580_vm3, %v600_v37, %v601_v35  ;;  %v603_v52 = vrot.slane %v524_v48, 1  ;;  %v672_v57 = vrot.slane %v1941_v41, 2  ;;  %v658_v61 = vrot.slane %v1990_v59, 2 }
 0x179   : > { %v2102_v44 = vsel %vm580_vm3, %v585_v40, %v589_v43  ;;  %v2111_v50 = vsel %vm580_vm3, %v584_v49, %v585_v40  ;;  %v662_v63 = vrot.slane %v523_v36, 2  ;;  %v675_v4 = vrot.slane %v524_v48, 2 }
 0x17a   : > { %557 = vrot.lane.b32.xlu0 %v1941_v41, %s1630_s9  ;;  %811 = vrot.lane.b32.xlu1 %v1944_v42, %s1630_s9  ;;  %v604_v53 = vsel %vm580_vm3, %v601_v35, %v603_v52  ;;  %v674_v58 = vsel %vm653_vm2, %v672_v57, %v673_v54  ;;  %v657_v41 = vrot.slane %v1926_v31, 2  ;;  %v855_v7 = vrot.slane %v1955_v46, 1 }
 0x17b   : > { %v2128_v3 = vsel %vm653_vm2, %v658_v61, %v662_v63  ;;  %v676_v6 = vsel %vm653_vm2, %v673_v54, %v675_v4  ;;  %v780_v8 = vsel %vm501_vm1, %v764_v0, -inf  ;;  %v854_v17 = vrot.slane %v1952_v45, 1 }
 0x17c   : > { %v839_v21 = vrot.slane %v2017_v2, 1  ;;  %v843_v23 = vrot.slane %v780_v8, 1  ;;  %v857_v27 = vrot.slane %v1958_v47, 1  ;;  %v911_v47 = vrot.slane %v2017_v2, 2 }
 0x17d   : > { %v856_v20 = vsel %vm580_vm3, %v854_v17, %v855_v7  ;;  %v915_v37 = vrot.slane %v780_v8, 2  ;;  %v910_v48 = vrot.slane %v1944_v42, 2 }
 0x17e   : > { %789 = vrot.lane.b32.xlu0 %v1952_v45, %s1629_s7  ;;  %534 = vrot.lane.b32.xlu1 %v1967_v51, %s1629_s7  ;;  %v2157_v62 = vsel %vm580_vm3, %v839_v21, %v843_v23  ;;  %v858_v34 = vsel %vm580_vm3, %v855_v7, %v857_v27 }
 0x17f   : > { %2875 = vst [vmem:[#allocation13_spill] sm:$0xff] %v2157_v62  ;;  %v2192_v43 = vsel %vm653_vm2, %v911_v47, %v915_v37 }
 0x180   : > { %2878 = vst [vmem:[#allocation16_spill] sm:$0xff] %v2192_v43 }
 0x182   : > { %813 = vrot.lane.b32.xlu0 %v1952_v45, %s1630_s9  ;;  %559 = vrot.lane.b32.xlu1 %v1967_v51, %s1630_s9  ;;  %v838_v45 = vrot.slane %v1944_v42, 1 }
 0x184   : > { %v2166_v26 = vsel %vm580_vm3, %v838_v45, %v839_v21 }
 0x185   : > { %2876 = vst [vmem:[#allocation14_spill] sm:$0xff] %v2166_v26 }
 0x186   : > { %536 = vrot.lane.b32.xlu0 %v1990_v59, %s1629_s7  ;;  %791 = vrot.lane.b32.xlu1 %v1993_v60, %s1629_s7 }
 0x18a   : > { %561 = vrot.lane.b32.xlu0 %v1990_v59, %s1630_s9  ;;  %815 = vrot.lane.b32.xlu1 %v1993_v60, %s1630_s9 }
 0x18e   : > { %538 = vrot.lane.b32.xlu1 %v2012_v1, %s1629_s7  ;;  %793 = vrot.lane.b32.xlu0 %v2017_v2, %s1629_s7 }
 0x192   : > { %563 = vrot.lane.b32.xlu1 %v2012_v1, %s1630_s9  ;;  %817 = vrot.lane.b32.xlu0 %v2017_v2, %s1630_s9  ;;  %v2135_v1 = vsel %vm653_vm2, %v657_v41, %v658_v61 }
 0x196   : > { %795 = vrot.lane.b32.xlu1 %v1955_v46, %s1629_s7  ;;  %605 = vrot.lane.b32.xlu0 %v2030_v5, %s1629_s7 }
 0x19a   : > { %819 = vrot.lane.b32.xlu1 %v1955_v46, %s1630_s9  ;;  %629 = vrot.lane.b32.xlu0 %v2030_v5, %s1630_s9 }
 0x19e   : > { %611 = vrot.lane.b32.xlu1 %v2044_v18, %s1629_s7  ;;  %677 = vrot.lane.b32.xlu0 %v2047_v19, %s1629_s7 }
 0x1a2   : > { %635 = vrot.lane.b32.xlu1 %v2044_v18, %s1630_s9  ;;  %701 = vrot.lane.b32.xlu0 %v2047_v19, %s1630_s9 }
 0x1a6   : > { %683 = vrot.lane.b32.xlu1 %v2060_v24, %s1629_s7  ;;  %859 = vrot.lane.b32.xlu0 %v2063_v25, %s1629_s7 }
 0x1aa   : > { %707 = vrot.lane.b32.xlu1 %v2060_v24, %s1630_s9  ;;  %883 = vrot.lane.b32.xlu0 %v2063_v25, %s1630_s9  ;;  %v218_v25 = vlaneseq }
 0x1ae   : > { %865 = vrot.lane.b32.xlu1 %v2077_v32, %s1629_s7  ;;  %930 = vrot.lane.b32.xlu0 %v2080_v33, %s1629_s7 }
 0x1b2   : > { %889 = vrot.lane.b32.xlu1 %v2077_v32, %s1630_s9  ;;  %954 = vrot.lane.b32.xlu0 %v2080_v33, %s1630_s9 }
 0x1b6   : > { %936 = vrot.lane.b32.xlu1 %v2094_v38, %s1629_s7  ;;  %609 = vrot.lane.b32.xlu0 %v602_v39, %s1629_s7 }
 0x1ba   : > { %960 = vrot.lane.b32.xlu1 %v2094_v38, %s1630_s9  ;;  %613 = vrot.lane.b32.xlu0 %v2102_v44, %s1629_s7 }
 0x1be   : > { %607 = vrot.lane.b32.xlu1 %v2111_v50, %s1629_s7  ;;  %633 = vrot.lane.b32.xlu0 %v602_v39, %s1630_s9 }
 0x1c2   : > { %615 = vrot.lane.b32.xlu1 %v604_v53, %s1629_s7  ;;  %637 = vrot.lane.b32.xlu0 %v2102_v44, %s1630_s9 }
 0x1c6   : > { %631 = vrot.lane.b32.xlu1 %v2111_v50, %s1630_s9  ;;  %681 = vrot.lane.b32.xlu0 %v674_v58, %s1629_s7 }
 0x1ca   : > { %639 = vrot.lane.b32.xlu1 %v604_v53, %s1630_s9  ;;  %685 = vrot.lane.b32.xlu0 %v2128_v3, %s1629_s7  ;;  %v2201_v53 = vsel %vm653_vm2, %v910_v48, %v911_v47 }
 0x1cb   : > { %2879 = vst [vmem:[#allocation17_spill] sm:$0xff] %v2201_v53 }
 0x1ce   : > { %679 = vrot.lane.b32.xlu1 %v2135_v1, %s1629_s7  ;;  %705 = vrot.lane.b32.xlu0 %v674_v58, %s1630_s9 }
 0x1d2   : > { %687 = vrot.lane.b32.xlu1 %v676_v6, %s1629_s7  ;;  %709 = vrot.lane.b32.xlu0 %v2128_v3, %s1630_s9 }
 0x1d6   : > { %703 = vrot.lane.b32.xlu1 %v2135_v1, %s1630_s9  ;;  %863 = vrot.lane.b32.xlu0 %v856_v20, %s1629_s7 }
 0x1d8   : > { %v2154_v46 = vpop.permute.xlu0 %528 }
 0x1da   : > { %711 = vrot.lane.b32.xlu1 %v676_v6, %s1630_s9  ;;  %867 = vrot.lane.b32.xlu0 %v2157_v62, %s1629_s7 }
 0x1dc   : > { %v2163_v0 = vpop.permute.xlu0 %553 }
 0x1de   : > { %887 = vrot.lane.b32.xlu0 %v856_v20, %s1630_s9  ;;  %861 = vrot.lane.b32.xlu1 %v2166_v26, %s1629_s7 }
 0x1e0   : > { %v2172_v28 = vpop.permute.xlu0 %785  ;;  %v2174_v29 = vpop.permute.xlu1 %530 }
 0x1e2   : > { %891 = vrot.lane.b32.xlu0 %v2157_v62, %s1630_s9  ;;  %869 = vrot.lane.b32.xlu1 %v858_v34, %s1629_s7 }
 0x1e4   : > { %v2180_v35 = vpop.permute.xlu0 %809  ;;  %v2182_v36 = vpop.permute.xlu1 %555 }
 0x1e5   : > { %2877 = vst [vmem:[#allocation15_spill] sm:$0xff] %v2180_v35 }
 0x1e6   : > { %934 = vrot.lane.b32.xlu0 %v1979_v55, %s1629_s7  ;;  %885 = vrot.lane.b32.xlu1 %v2166_v26, %s1630_s9 }
 0x1e8   : > { %v533_v39 = vpop.permute.xlu0 %532  ;;  %v2189_v40 = vpop.permute.xlu1 %787 }
 0x1ea   : > { %938 = vrot.lane.b32.xlu0 %v2192_v43, %s1629_s7  ;;  %893 = vrot.lane.b32.xlu1 %v858_v34, %s1630_s9 }
 0x1ec   : > { %v558_v49 = vpop.permute.xlu0 %557  ;;  %v2198_v52 = vpop.permute.xlu1 %811 }
 0x1ee   : > { %958 = vrot.lane.b32.xlu0 %v1979_v55, %s1630_s9  ;;  %932 = vrot.lane.b32.xlu1 %v2201_v53, %s1629_s7 }
 0x1f0   : > { %v2207_v54 = vpop.permute.xlu0 %789  ;;  %v535_v57 = vpop.permute.xlu1 %534 }
 0x1f2   : > { %962 = vrot.lane.b32.xlu0 %v2192_v43, %s1630_s9  ;;  %940 = vrot.lane.b32.xlu1 %v1982_v56, %s1629_s7 }
 0x1f4   : > { %v2213_v58 = vpop.permute.xlu0 %813  ;;  %v560_v61 = vpop.permute.xlu1 %559 }
 0x1f5   : > { %2880 = vst [vmem:[#allocation18_spill] sm:$0xff] %v2213_v58 }
 0x1f6   : > { %956 = vrot.lane.b32.xlu1 %v2201_v53, %s1630_s9 }
 0x1f8   : > { %v537_v63 = vpop.permute.xlu0 %536  ;;  %v2217_v55 = vpop.permute.xlu1 %791 }
 0x1f9   : > { %v543_v2 = vsel %vm540_vm4, %v535_v57, %v537_v63  ;;  %v566_v57 = vsel %vm565_vm5, %v2163_v0, %v2182_v36 }
 0x1fa   : > { %964 = vrot.lane.b32.xlu1 %v1982_v56, %s1630_s9 }
 0x1fc   : > { %v562_v41 = vpop.permute.xlu0 %561  ;;  %v2221_v4 = vpop.permute.xlu1 %815 }
 0x200   : > { %v2223_v6 = vpop.permute.xlu0 %793  ;;  %v539_v7 = vpop.permute.xlu1 %538 }
 0x204   : > { %v2225_v8 = vpop.permute.xlu0 %817  ;;  %v564_v17 = vpop.permute.xlu1 %563 }
 0x205   : > { %v569_v58 = vsel %vm565_vm5, %v562_v41, %v564_v17 }
 0x208   : > { %v606_v20 = vpop.permute.xlu0 %605  ;;  %v2227_v21 = vpop.permute.xlu1 %795 }
 0x209   : > { %2881 = vst [vmem:[#allocation19_spill] sm:$0xff] %v2227_v21 }
 0x20c   : > { %v2229_v23 = vpop.permute.xlu0 %629  ;;  %v2231_v45 = vpop.permute.xlu1 %819 }
 0x20d   : > { %2882 = vst [vmem:[#allocation20_spill] sm:$0xff] %v2231_v45  ;;  %v219_v45 = vshrl.u32 %v218_v25, 7 }
 0x20f   : > { %v220_v21 = vadd.s32 8, %v219_v45  ;;  %vm224_vm9 = vcmp.eq.s32.totalorder %v219_v45, 0 }
 0x210   : > { %v2233_v27 = vpop.permute.xlu0 %677  ;;  %v612_v34 = vpop.permute.xlu1 %611 }
 0x211   : > { %vm227_vm7 = vcmp.eq.s32.totalorder %v220_v21, 15 }
 0x214   : > { %v2235_v56 = vpop.permute.xlu0 %701  ;;  %v636_v47 = vpop.permute.xlu1 %635 }
 0x218   : > { %v2237_v37 = vpop.permute.xlu0 %859  ;;  %v2239_v48 = vpop.permute.xlu1 %683 }
 0x219   : > { %2883 = vst [vmem:[#allocation21_spill] sm:$0xff] %v2237_v37 }
 0x21c   : > { %v2241_v14 = vpop.permute.xlu0 %883  ;;  %v2243_v10 = vpop.permute.xlu1 %707 }
 0x21d   : > { %2884 = vst [vmem:[#allocation22_spill] sm:$0xff] %v2241_v14 }
 0x220   : > { %v2245_v12 = vpop.permute.xlu0 %930  ;;  %v2247_v13 = vpop.permute.xlu1 %865 }
 0x221   : > { %2885 = vst [vmem:[#allocation23_spill] sm:$0xff] %v2245_v12  ;;  %2886 = vst [vmem:[#allocation24_spill] sm:$0xff] %v2247_v13  ;;  %v568_v12 = vsel %vm565_vm5, %v560_v61, %v562_v41  ;;  %v222_v13 = vand.u32 127, %v218_v25  ;;  %v567_v61 = vsel %vm565_vm5, %v2182_v36, %v558_v49  ;;  %v1631_v49 = vmov 0.33333334  }
 0x222   : > { %v231_v35 = vsel %vm227_vm7, 0.5, %v1631_v49 }
 0x223   : > { %vm232_vm6 = vcmp.lt.s32.totalorder %v222_v13, 16 }
 0x224   : > { %v2249_v43 = vpop.permute.xlu0 %954  ;;  %v2251_v53 = vpop.permute.xlu1 %889 }
 0x225   : > { %2887 = vst [vmem:[#allocation25_spill] sm:$0xff] %v2249_v43  ;;  %2888 = vst [vmem:[#allocation26_spill] sm:$0xff] %v2251_v53  ;;  %v551_v43 = vadd.f32 %v543_v2, %v1967_v51 }
 0x227   : > { %v576_v42 = vadd.f32 %v568_v12, %v551_v43  ;;  %v223_v12 = vadd.s32 128, %v222_v13 }
 0x228   : > { %v610_v33 = vpop.permute.xlu0 %609  ;;  %v2253_v38 = vpop.permute.xlu1 %936 }
 0x229   : > { %2889 = vst [vmem:[#allocation27_spill] sm:$0xff] %v2253_v38  ;;  %v541_v38 = vsel %vm540_vm4, %v2154_v46, %v2174_v29  ;;  %v544_v46 = vsel %vm540_vm4, %v537_v63, %v539_v7  ;;  %v597_v0 = vadd.f32 %v2044_v18, %v576_v42  ;;  %v238_v63 = vsel %vm232_vm6, 0.5, %v1631_v49 }
 0x22a   : > { %v549_v51 = vadd.f32 %v541_v38, %v1914_v22  ;;  %v552_v22 = vadd.f32 %v544_v46, %v1990_v59  ;;  %vm235_vm8 = vcmp.ge.s32.totalorder %v223_v12, 240 }
 0x22c   : > { %v614_v62 = vpop.permute.xlu0 %613  ;;  %v2255_v26 = vpop.permute.xlu1 %960  ;;  %v577_v18 = vadd.f32 %v569_v58, %v552_v22 }
 0x22d   : > { %2890 = vst [vmem:[#allocation28_spill] sm:$0xff] %v2255_v26  ;;  %v542_v26 = vsel %vm540_vm4, %v2174_v29, %v533_v39  ;;  %v619_v29 = vsel %vm540_vm4, %v612_v34, %v614_v62  ;;  %v574_v39 = vadd.f32 %v566_v57, %v549_v51  ;;  %v239_v51 = vsel %vm235_vm8, 0.5, %v1631_v49 }
 0x22e   : > { %v550_v2 = vadd.f32 %v542_v26, %v1926_v31  ;;  %v627_v31 = vadd.f32 %v619_v29, %v597_v0 }
 0x22f   : > { %v595_v41 = vadd.f32 %v2030_v5, %v574_v39  ;;  %v598_v5 = vadd.f32 %v2102_v44, %v577_v18 }
 0x230   : > { %v634_v37 = vpop.permute.xlu0 %633  ;;  %v608_v14 = vpop.permute.xlu1 %607  ;;  %v575_v43 = vadd.f32 %v567_v61, %v550_v2 }
 0x231   : > { %v617_v7 = vsel %vm540_vm4, %v606_v20, %v608_v14  ;;  %v618_v21 = vsel %vm540_vm4, %v608_v14, %v610_v33  ;;  %v230_v14 = vsel %vm224_vm9, 0.5, %v1631_v49 }
 0x232   : > { %v596_v42 = vadd.f32 %v2111_v50, %v575_v43  ;;  %v625_v13 = vadd.f32 %v617_v7, %v595_v41 }
 0x234   : > { %v638_v32 = vpop.permute.xlu0 %637  ;;  %v616_v53 = vpop.permute.xlu1 %615  ;;  %v626_v57 = vadd.f32 %v618_v21, %v596_v42 }
 0x235   : > { %v643_v36 = vsel %vm565_vm5, %v636_v47, %v638_v32  ;;  %v242_v47 = vmul.f32 %v238_v63, %v231_v35  ;;  %v620_v33 = vsel %vm540_vm4, %v614_v62, %v616_v53  ;;  %v240_v62 = vmul.f32 %v238_v63, %v230_v14 }
 0x236   : > { %v651_v17 = vadd.f32 %v643_v36, %v627_v31  ;;  %v628_v2 = vadd.f32 %v620_v33, %v598_v5  ;;  %v243_v36 = vmul.f32 %v239_v51, %v231_v35  ;;  %v2891_v5 = vld [vmem:[#allocation15_spill] sm:$0xff] }
 0x237   : > { %v2292_v29 = vmul.f32 0.999995, %v242_v47 }
 0x238   : > { %v682_v25 = vpop.permute.xlu0 %681  ;;  %v632_v30 = vpop.permute.xlu1 %631 }
 0x239   : > { %v641_v59 = vsel %vm565_vm5, %v2229_v23, %v632_v30  ;;  %v642_v34 = vsel %vm565_vm5, %v632_v30, %v634_v37  ;;  %v670_v23 = vadd.f32 %v2060_v24, %v651_v17  ;;  %v241_v37 = vmul.f32 %v239_v51, %v230_v14 }
 0x23a   : > { %v649_v58 = vadd.f32 %v641_v59, %v625_v13  ;;  %v650_v45 = vadd.f32 %v642_v34, %v626_v57  ;;  %v2320_v17 = vmul.f32 0.999995, %v243_v36 }
 0x23b   : > { %v2302_v22 = vmul.f32 0.999995, %v241_v37 }
 0x23c   : > { %v686_v38 = vpop.permute.xlu0 %685  ;;  %v640_v26 = vpop.permute.xlu1 %639  ;;  %v669_v43 = vadd.f32 %v2135_v1, %v650_v45  ;;  %v2893_v45 = vld [vmem:[#allocation6_spill] sm:$0xff] }
 0x23d   : > { %v691_v50 = vsel %vm540_vm4, %v2239_v48, %v686_v38  ;;  %v644_v30 = vsel %vm565_vm5, %v638_v32, %v640_v26  ;;  %v668_v32 = vadd.f32 %v2047_v19, %v649_v58  ;;  %v821_v58 = vsel %vm565_vm5, %v2891_v5, %v2198_v52 }
 0x23e   : > { %v699_v46 = vadd.f32 %v691_v50, %v670_v23  ;;  %v652_v24 = vadd.f32 %v644_v30, %v628_v2  ;;  %v797_v50 = vsel %vm540_vm4, %v2172_v28, %v2189_v40  ;;  %v2894_v30 = vld [vmem:[#allocation7_spill] sm:$0xff] }
 0x23f   : > { %v805_v23 = vmax.f32 %v2893_v45, %v797_v50  ;;  %v2895_v28 = vld [vmem:[#allocation19_spill] sm:$0xff] }
 0x240   : > { %v706_v61 = vpop.permute.xlu0 %705  ;;  %v680_v20 = vpop.permute.xlu1 %679  ;;  %v671_v35 = vadd.f32 %v2128_v3, %v652_v24  ;;  %v2899_v24 = vld [vmem:[#allocation26_spill] sm:$0xff]  ;;  %v2908_v45 = vld [vmem:[#allocation23_spill] sm:$0xff] }
 0x241   : > { %v689_v53 = vsel %vm540_vm4, %v2233_v27, %v680_v20  ;;  %v690_v48 = vsel %vm540_vm4, %v680_v20, %v682_v25  ;;  %v2305_v25 = vmul.f32 0.999995, %v240_v62  ;;  %v799_v20 = vsel %vm540_vm4, %v2217_v55, %v2223_v6 }
 0x242   : > { %v697_v31 = vadd.f32 %v689_v53, %v668_v32  ;;  %v698_v26 = vadd.f32 %v690_v48, %v669_v43  ;;  %v798_v55 = vsel %vm540_vm4, %v2189_v40, %v2207_v54  ;;  %v2896_v40 = vld [vmem:[#allocation24_spill] sm:$0xff]  ;;  %v2897_v53 = vld [vmem:[#allocation10_spill] sm:$0xff] }
 0x243   : > { %v806_v37 = vmax.f32 %v2894_v30, %v798_v55  ;;  %v2900_v43 = vld [vmem:[#allocation8_spill] sm:$0xff] }
 0x244   : > { %v710_v12 = vpop.permute.xlu0 %709  ;;  %v688_v39 = vpop.permute.xlu1 %687  ;;  %v2907_v55 = vld [vmem:[#allocation12_spill] sm:$0xff] }
 0x245   : > { %v715_v44 = vsel %vm565_vm5, %v2243_v10, %v710_v12  ;;  %v692_v10 = vsel %vm540_vm4, %v686_v38, %v688_v39  ;;  %v829_v39 = vmax.f32 %v805_v23, %v821_v58 }
 0x246   : > { %v723_v0 = vadd.f32 %v715_v44, %v699_v46  ;;  %v700_v18 = vadd.f32 %v692_v10, %v671_v35  ;;  %v2898_v44 = vld [vmem:[#allocation20_spill] sm:$0xff]  ;;  %v2903_v35 = vld [vmem:[#allocation14_spill] sm:$0xff] }
 0x248   : > { %v727_v49 = vmul.f32 %v723_v0, %v2292_v29  ;;  %v864_v27 = vpop.permute.xlu0 %863  ;;  %v704_v63 = vpop.permute.xlu1 %703 }
 0x249   : > { %v713_v19 = vsel %vm565_vm5, %v2235_v56, %v704_v63  ;;  %v714_v1 = vsel %vm565_vm5, %v704_v63, %v706_v61 }
 0x24a   : > { %v721_v7 = vadd.f32 %v713_v19, %v697_v31  ;;  %v722_v21 = vadd.f32 %v714_v1, %v698_v26  ;;  %v2318_v42 = vadd.f32 %v727_v49, %v1900_v15  ;;  %v2902_v19 = vld [vmem:[#allocation9_spill] sm:$0xff] }
 0x24b   : > { %v849_v1 = vmax.f32 %v829_v39, %v2902_v19 }
 0x24c   : > { %v868_v41 = vpop.permute.xlu0 %867  ;;  %v712_v59 = vpop.permute.xlu1 %711  ;;  %v726_v38 = vmul.f32 %v722_v21, %v2302_v22  ;;  %v725_v56 = vmul.f32 %v721_v7, %v2305_v25  ;;  %1494 = vst [vmem:[%s2310_s16 + $0x10] sm:$0xff] %v2318_v42 }
 0x24d   : > { %v716_v3 = vsel %vm565_vm5, %v710_v12, %v712_v59  ;;  %v800_v12 = vsel %vm540_vm4, %v2223_v6, %v2895_v28  ;;  %v873_v54 = vsel %vm540_vm4, %v2896_v40, %v868_v41  ;;  %v2901_v6 = vld [vmem:[#allocation21_spill] sm:$0xff] }
 0x24e   : > { %v724_v34 = vadd.f32 %v716_v3, %v700_v18  ;;  %v2328_v47 = vadd.f32 %v726_v38, %v1886_v11  ;;  %v2331_v15 = vadd.f32 %v725_v56, %v1880_v9  ;;  %v823_v9 = vsel %vm565_vm5, %v2221_v4, %v2225_v8  ;;  %v2892_v4 = vld [vmem:[#allocation18_spill] sm:$0xff] }
 0x24f   : > { %v807_v11 = vmax.f32 %v1993_v60, %v799_v20  ;;  %v822_v60 = vsel %vm565_vm5, %v2198_v52, %v2892_v4  ;;  %v824_v52 = vsel %vm565_vm5, %v2225_v8, %v2898_v44  ;;  %v808_v0 = vmax.f32 %v2900_v43, %v800_v12  ;;  %v2904_v8 = vld [vmem:[#allocation22_spill] sm:$0xff]  ;;  %v2905_v20 = vld [vmem:[#allocation27_spill] sm:$0xff]  ;;  %v2911_v12 = vld [vmem:[#allocation17_spill] sm:$0xff] }
 0x250   : > { %v728_v13 = vmul.f32 %v724_v34, %v2320_v17  ;;  %v888_v57 = vpop.permute.xlu0 %887  ;;  %v862_v61 = vpop.permute.xlu1 %861  ;;  %1493 = vst [vmem:[%s2310_s16 + $0x8] sm:$0xff] %v2328_v47  ;;  %1492 = vst [vmem:[%s2310_s16] sm:$0xff] %v2331_v15  ;;  %v830_v62 = vmax.f32 %v806_v37, %v822_v60  ;;  %v2912_v44 = vld [vmem:[#allocation25_spill] sm:$0xff] }
 0x251   : > { %v871_v49 = vsel %vm540_vm4, %v2901_v6, %v862_v61  ;;  %v872_v63 = vsel %vm540_vm4, %v862_v61, %v864_v27  ;;  %v832_v10 = vmax.f32 %v808_v0, %v824_v52  ;;  %v2906_v61 = vld [vmem:[#allocation13_spill] sm:$0xff] }
 0x252   : > { %v2342_v51 = vadd.f32 %v728_v13, %v1906_v16  ;;  %v831_v16 = vmax.f32 %v807_v11, %v823_v9  ;;  %v850_v7 = vmax.f32 %v830_v62, %v2903_v35  ;;  %v879_v38 = vmax.f32 %v849_v1, %v871_v49  ;;  %v2915_v1 = vld [vmem:[#allocation3_spill] sm:$0xff] }
 0x253   : > { %v852_v9 = vmax.f32 %v832_v10, %v2906_v61 }
 0x254   : > { %v892_v14 = vpop.permute.xlu0 %891  ;;  %v870_v33 = vpop.permute.xlu1 %869  ;;  %1495 = vst [vmem:[%s2310_s16 + $0x18] sm:$0xff] %v2342_v51  ;;  %v851_v48 = vmax.f32 %v831_v16, %v2897_v53  ;;  %v880_v56 = vmax.f32 %v850_v7, %v872_v63  ;;  %v2916_v7 = vld [vmem:[#allocation2_spill] sm:$0xff] }
 0x255   : > { %v897_v32 = vsel %vm565_vm5, %v2899_v24, %v892_v14  ;;  %v874_v13 = vsel %vm540_vm4, %v868_v41, %v870_v33  ;;  %v2909_v33 = vld [vmem:[#allocation28_spill] sm:$0xff] }
 0x256   : > { %v881_v36 = vmax.f32 %v851_v48, %v873_v54  ;;  %v882_v58 = vmax.f32 %v852_v9, %v874_v13  ;;  %v2913_v24 = vld [vmem:[#allocation16_spill] sm:$0xff] }
 0x258   : > { %v935_v2 = vpop.permute.xlu0 %934  ;;  %v886_v46 = vpop.permute.xlu1 %885  ;;  %v905_v21 = vmax.f32 %v881_v36, %v897_v32  ;;  %v2914_v36 = vld [vmem:[#allocation4_spill] sm:$0xff] }
 0x259   : > { %v895_v18 = vsel %vm565_vm5, %v2904_v8, %v886_v46  ;;  %v896_v59 = vsel %vm565_vm5, %v886_v46, %v888_v57  ;;  %v2910_v46 = vld [vmem:[#allocation11_spill] sm:$0xff] }
 0x25a   : > { %v903_v11 = vmax.f32 %v879_v38, %v895_v18  ;;  %v904_v50 = vmax.f32 %v880_v56, %v896_v59  ;;  %v923_v16 = vmax.f32 %v905_v21, %v2907_v55  ;;  %v2917_v18 = vld [vmem:[#allocation5_spill] sm:$0xff] }
 0x25c   : > { %v939_v31 = vpop.permute.xlu0 %938  ;;  %v894_v26 = vpop.permute.xlu1 %893  ;;  %v921_v28 = vmax.f32 %v903_v11, %v2910_v46  ;;  %v922_v40 = vmax.f32 %v904_v50, %v2911_v12 }
 0x25d   : > { %v944_v27 = vsel %vm540_vm4, %v2905_v20, %v939_v31  ;;  %v898_v5 = vsel %vm565_vm5, %v892_v14, %v894_v26 }
 0x25e   : > { %v952_v4 = vmax.f32 %v923_v16, %v944_v27  ;;  %v906_v37 = vmax.f32 %v882_v58, %v898_v5 }
 0x260   : > { %v959_v3 = vpop.permute.xlu0 %958  ;;  %v933_v34 = vpop.permute.xlu1 %932  ;;  %v924_v32 = vmax.f32 %v906_v37, %v2913_v24 }
 0x261   : > { %v942_v23 = vsel %vm540_vm4, %v2908_v45, %v933_v34  ;;  %v943_v41 = vsel %vm540_vm4, %v933_v34, %v935_v2 }
 0x262   : > { %v950_v14 = vmax.f32 %v921_v28, %v942_v23  ;;  %v951_v39 = vmax.f32 %v922_v40, %v943_v41 }
 0x264   : > { %v963_v57 = vpop.permute.xlu0 %962  ;;  %v941_v60 = vpop.permute.xlu1 %940 }
 0x265   : > { %v968_v30 = vsel %vm565_vm5, %v2909_v33, %v963_v57  ;;  %v945_v48 = vsel %vm540_vm4, %v939_v31, %v941_v60 }
 0x266   : > { %v976_v54 = vmax.f32 %v952_v4, %v968_v30  ;;  %v953_v6 = vmax.f32 %v924_v32, %v945_v48 }
 0x268   : > { %v980_v62 = vmul.f32 0.999995, %v976_v54  ;;  %v957_v53 = vpop.permute.xlu1 %956 }
 0x269   : > { %v966_v52 = vsel %vm565_vm5, %v2912_v44, %v957_v53  ;;  %v967_v2 = vsel %vm565_vm5, %v957_v53, %v959_v3 }
 0x26a   : > { %v974_v43 = vmax.f32 %v950_v14, %v966_v52  ;;  %v975_v0 = vmax.f32 %v951_v39, %v967_v2  ;;  %v984_v26 = vadd.f32 %v980_v62, %v2914_v36 }
 0x26c   : > { %v978_v49 = vmul.f32 0.999995, %v974_v43  ;;  %v979_v63 = vmul.f32 0.999995, %v975_v0  ;;  %v965_v10 = vpop.permute.xlu1 %964  ;;  %1591 = vst [vmem:[%s2310_s16 + $0x30] sm:$0xff] %v984_v26 }
 0x26d   : > { %v969_v31 = vsel %vm565_vm5, %v963_v57, %v965_v10 }
 0x26e   : > { %v977_v19 = vmax.f32 %v953_v6, %v969_v31  ;;  %v983_v35 = vadd.f32 %v979_v63, %v2915_v1  ;;  %v982_v21 = vadd.f32 %v978_v49, %v2916_v7 }
 0x270   : > { %v981_v8 = vmul.f32 0.999995, %v977_v19  ;;  %992 = vrot.lane.b32.xlu1 %v983_v35, %s1628_s8  ;;  %1590 = vst [vmem:[%s2310_s16 + $0x28] sm:$0xff] %v983_v35  ;;  %990 = vrot.lane.b32.xlu0 %v982_v21, %s1628_s8  ;;  %1589 = vst [vmem:[%s2310_s16 + $0x20] sm:$0xff] %v982_v21 }
 0x272   : > { %v985_v59 = vadd.f32 %v981_v8, %v2917_v18 }
 0x274   : > { %1245 = vrot.lane.b32.xlu1 %v2328_v47, %s1628_s8  ;;  %1243 = vrot.lane.b32.xlu0 %v2331_v15, %s1628_s8  ;;  %1592 = vst [vmem:[%s2310_s16 + $0x38] sm:$0xff] %v985_v59 }
 0x278   : > { %994 = vrot.lane.b32.xlu0 %v984_v26, %s1628_s8  ;;  %996 = vrot.lane.b32.xlu1 %v985_v59, %s1628_s8 }
 0x27c   : > { %1247 = vrot.lane.b32.xlu0 %v2318_v42, %s1628_s8  ;;  %1249 = vrot.lane.b32.xlu1 %v2342_v51, %s1628_s8 }
 0x2e2   : > { %v991_v38 = vpop.permute.xlu0 %990  ;;  %v993_v56 = vpop.permute.xlu1 %992 }
 0x2e3   : > { %v1004_v3 = vsel %vm486_vm0, 0.0, %v991_v38  ;;  %v998_v34 = vsel %vm486_vm0, %v991_v38, %v993_v56  ;;  %v1006_v13 = vsel %vm486_vm0, %v993_v56, 0.0 }
 0x2e4   : > { %v1012_v20 = vrot.slane %v1004_v3, 7  ;;  %v1013_v27 = vrot.slane %v998_v34, 7  ;;  %v1014_v9 = vrot.slane %v1006_v13, 7 }
 0x2e6   : > { %v2427_v61 = vsel %vm501_vm1, 0.0, %v1012_v20  ;;  %v2430_v11 = vsel %vm501_vm1, 0.0, %v1013_v27  ;;  %v1244_v50 = vpop.permute.xlu0 %1243  ;;  %v1246_v55 = vpop.permute.xlu1 %1245  ;;  %v2438_v4 = vsel %vm501_vm1, 0.0, %v1014_v9 }
 0x2e7   : > { %v1257_v16 = vsel %vm486_vm0, -inf, %v1244_v50  ;;  %1038 = vrot.lane.b32.xlu0 %v2427_v61, %s1629_s7  ;;  %1040 = vrot.lane.b32.xlu1 %v2430_v11, %s1629_s7  ;;  %v1259_v57 = vsel %vm486_vm0, %v1246_v55, -inf  ;;  %v1251_v41 = vsel %vm486_vm0, %v1244_v50, %v1246_v55  ;;  %v1088_v35 = vrot.slane %v2427_v61, 1 }
 0x2e8   : > { %v1265_v5 = vrot.slane %v1257_v16, 7  ;;  %v1267_v45 = vrot.slane %v1259_v57, 7  ;;  %v1266_v30 = vrot.slane %v1251_v41, 7  ;;  %v1091_v7 = vrot.slane %v2430_v11, 1 }
 0x2e9   : > { %v1107_v3 = vrot.slane %v2438_v4, 1 }
 0x2ea   : > { %v997_v58 = vpop.permute.xlu1 %996  ;;  %v2446_v60 = vsel %vm501_vm1, -inf, %v1265_v5  ;;  %v2458_v46 = vsel %vm501_vm1, -inf, %v1267_v45  ;;  %v995_v28 = vpop.permute.xlu0 %994  ;;  %v2465_v12 = vsel %vm501_vm1, -inf, %v1266_v30 }
 0x2eb   : > { %1042 = vrot.lane.b32.xlu0 %v2438_v4, %s1629_s7  ;;  %1064 = vrot.lane.b32.xlu1 %v2430_v11, %s1630_s9  ;;  %v1005_v54 = vsel %vm486_vm0, 0.0, %v995_v28  ;;  %v999_v14 = vsel %vm486_vm0, %v995_v28, %v997_v58  ;;  %v1431_v48 = vrot.slane %v2458_v46, 2  ;;  %v1007_v44 = vsel %vm486_vm0, %v997_v58, 0.0 }
 0x2ec   : > { %v1015_v62 = vrot.slane %v1005_v54, 7  ;;  %v1017_v53 = vrot.slane %v999_v14, 7  ;;  %v1019_v24 = vrot.slane %v1007_v44, 7  ;;  %v1163_v58 = vrot.slane %v2430_v11, 2 }
 0x2ed   : > { %v1341_v44 = vrot.slane %v2446_v60, 1 }
 0x2ee   : > { %v1250_v23 = vpop.permute.xlu1 %1249  ;;  %v1248_v52 = vpop.permute.xlu0 %1247  ;;  %v2491_v32 = vsel %vm501_vm1, %v1012_v20, %v1015_v62  ;;  %v2494_v43 = vsel %vm501_vm1, %v1013_v27, %v1017_v53  ;;  %v2505_v26 = vsel %vm501_vm1, %v1014_v9, %v1019_v24  ;;  %v1032_v1 = vsel %vm501_vm1, %v1015_v62, 0.0 }
 0x2ef   : > { %1062 = vrot.lane.b32.xlu0 %v2427_v61, %s1630_s9  ;;  %1291 = vrot.lane.b32.xlu1 %v2446_v60, %s1629_s7  ;;  %v2454_v33 = vsel %vm486_vm0, %v1250_v23, -inf  ;;  %v2497_v0 = vsel %vm486_vm0, -inf, %v1248_v52  ;;  %v2517_v49 = vsel %vm486_vm0, %v1248_v52, %v1250_v23  ;;  %v1089_v31 = vrot.slane %v2491_v32, 1 }
 0x2f0   : > { %v1272_v37 = vrot.slane %v2454_v33, 7  ;;  %v1268_v36 = vrot.slane %v2497_v0, 7  ;;  %v1270_v63 = vrot.slane %v2517_v49, 7  ;;  %v1092_v19 = vrot.slane %v2494_v43, 1 }
 0x2f1   : > { %v1094_v21 = vrot.slane %v1032_v1, 1  ;;  %v1108_v8 = vrot.slane %v2505_v26, 1  ;;  %v2548_v18 = vsel %vm580_vm3, %v1088_v35, %v1089_v31  ;;  %v1033_v38 = vsel %vm501_vm1, %v1017_v53, 0.0 }
 0x2f2   : > { %v2470_v40 = vsel %vm501_vm1, %v1267_v45, %v1272_v37  ;;  %v2514_v6 = vsel %vm501_vm1, %v1265_v5, %v1268_v36  ;;  %v2531_v10 = vsel %vm501_vm1, %v1266_v30, %v1270_v63  ;;  %v2551_v59 = vsel %vm580_vm3, %v1091_v7, %v1092_v19 }
 0x2f3   : > { %1066 = vrot.lane.b32.xlu0 %v2438_v4, %s1630_s9  ;;  %1295 = vrot.lane.b32.xlu1 %v2458_v46, %s1629_s7  ;;  %v1432_v39 = vrot.slane %v2470_v40, 2  ;;  %v1034_v56 = vsel %vm501_vm1, %v1019_v24, 0.0  ;;  %v1096_v34 = vrot.slane %v1033_v38, 1  ;;  %v1109_v20 = vsel %vm580_vm3, %v1107_v3, %v1108_v8 }
 0x2f4   : > { %v1110_v13 = vrot.slane %v1034_v56, 1  ;;  %v2562_v27 = vsel %vm580_vm3, %v1089_v31, %v1094_v21  ;;  %v1161_v55 = vrot.slane %v2491_v32, 2  ;;  %v1164_v16 = vrot.slane %v2494_v43, 2 }
 0x2f5   : > { %v2488_v2 = vsel %vm653_vm2, %v1431_v48, %v1432_v39  ;;  %v2568_v9 = vsel %vm580_vm3, %v1092_v19, %v1096_v34  ;;  %v1160_v5 = vrot.slane %v2427_v61, 2  ;;  %v1166_v57 = vrot.slane %v1032_v1, 2 }
 0x2f6   : > { %v1111_v50 = vsel %vm580_vm3, %v1108_v8, %v1110_v13  ;;  %v1179_v45 = vrot.slane %v2505_v26, 2  ;;  %v2593_v41 = vsel %vm653_vm2, %v1163_v58, %v1164_v16  ;;  %v1178_v30 = vrot.slane %v2438_v4, 2 }
 0x2f7   : > { %1315 = vrot.lane.b32.xlu1 %v2446_v60, %s1630_s9  ;;  %1293 = vrot.lane.b32.xlu0 %v2465_v12, %s1629_s7  ;;  %v2590_v23 = vsel %vm653_vm2, %v1160_v5, %v1161_v55  ;;  %v1168_v28 = vrot.slane %v1033_v38, 2  ;;  %v1181_v54 = vrot.slane %v1034_v56, 2  ;;  %v2602_v62 = vsel %vm653_vm2, %v1161_v55, %v1166_v57 }
 0x2f8   : > { %v1180_v14 = vsel %vm653_vm2, %v1178_v30, %v1179_v45  ;;  %v1342_v4 = vrot.slane %v2514_v6, 1  ;;  %v1361_v52 = vrot.slane %v2470_v40, 1  ;;  %v1285_v31 = vsel %vm501_vm1, %v1268_v36, -inf }
 0x2f9   : > { %v2608_v53 = vsel %vm653_vm2, %v1164_v16, %v1168_v28  ;;  %v1182_v48 = vsel %vm653_vm2, %v1179_v45, %v1181_v54  ;;  %v1286_v19 = vsel %vm501_vm1, %v1270_v63, -inf  ;;  %v1360_v1 = vrot.slane %v2458_v46, 1 }
 0x2fa   : > { %v2622_v24 = vsel %vm580_vm3, %v1341_v44, %v1342_v4  ;;  %v1344_v35 = vrot.slane %v2465_v12, 1  ;;  %v1347_v7 = vrot.slane %v1285_v31, 1  ;;  %v1349_v21 = vrot.slane %v1286_v19, 1 }
 0x2fb   : > { %1319 = vrot.lane.b32.xlu1 %v2458_v46, %s1630_s9  ;;  %1317 = vrot.lane.b32.xlu0 %v2465_v12, %s1630_s9  ;;  %v1362_v8 = vsel %vm580_vm3, %v1360_v1, %v1361_v52  ;;  %v1287_v36 = vsel %vm501_vm1, %v1272_v37, -inf  ;;  %v1417_v3 = vrot.slane %v2531_v10, 2  ;;  %v1414_v34 = vrot.slane %v2514_v6, 2 }
 0x2fc   : > { %v1363_v49 = vrot.slane %v1287_v36, 1  ;;  %v2650_v63 = vsel %vm580_vm3, %v1342_v4, %v1347_v7  ;;  %v1416_v13 = vrot.slane %v2465_v12, 2  ;;  %v1419_v16 = vrot.slane %v1285_v31, 2 }
 0x2fd   : > { %v1421_v54 = vrot.slane %v1286_v19, 2 }
 0x2fe   : > { %v1364_v33 = vsel %vm580_vm3, %v1361_v52, %v1363_v49  ;;  %v2680_v58 = vsel %vm653_vm2, %v1416_v13, %v1417_v3  ;;  %v2692_v4 = vsel %vm653_vm2, %v1414_v34, %v1419_v16 }
 0x2ff   : > { %1044 = vrot.lane.b32.xlu1 %v2491_v32, %s1629_s7  ;;  %1046 = vrot.lane.b32.xlu0 %v2494_v43, %s1629_s7  ;;  %v2706_v1 = vsel %vm653_vm2, %v1417_v3, %v1421_v54 }
 0x303   : > { %1048 = vrot.lane.b32.xlu1 %v2505_v26, %s1629_s7  ;;  %1070 = vrot.lane.b32.xlu0 %v2494_v43, %s1630_s9 }
 0x307   : > { %1068 = vrot.lane.b32.xlu1 %v2491_v32, %s1630_s9  ;;  %1297 = vrot.lane.b32.xlu0 %v2514_v6, %s1629_s7 }
 0x30b   : > { %1072 = vrot.lane.b32.xlu1 %v2505_v26, %s1630_s9  ;;  %1301 = vrot.lane.b32.xlu0 %v2470_v40, %s1629_s7  ;;  %v1345_v26 = vrot.slane %v2531_v10, 1 }
 0x30d   : > { %v2638_v0 = vsel %vm580_vm3, %v1344_v35, %v1345_v26  ;;  %v2647_v46 = vsel %vm580_vm3, %v1345_v26, %v1349_v21 }
 0x30f   : > { %1321 = vrot.lane.b32.xlu0 %v2514_v6, %s1630_s9  ;;  %1299 = vrot.lane.b32.xlu1 %v2531_v10, %s1629_s7 }
 0x313   : > { %1325 = vrot.lane.b32.xlu0 %v2470_v40, %s1630_s9  ;;  %1323 = vrot.lane.b32.xlu1 %v2531_v10, %s1630_s9 }
 0x317   : > { %1112 = vrot.lane.b32.xlu0 %v2548_v18, %s1629_s7  ;;  %1114 = vrot.lane.b32.xlu1 %v2551_v59, %s1629_s7 }
 0x31b   : > { %1116 = vrot.lane.b32.xlu0 %v1109_v20, %s1629_s7  ;;  %1118 = vrot.lane.b32.xlu1 %v2562_v27, %s1629_s7 }
 0x31f   : > { %1120 = vrot.lane.b32.xlu0 %v2568_v9, %s1629_s7  ;;  %1122 = vrot.lane.b32.xlu1 %v1111_v50, %s1629_s7 }
 0x323   : > { %1136 = vrot.lane.b32.xlu0 %v2548_v18, %s1630_s9  ;;  %1138 = vrot.lane.b32.xlu1 %v2551_v59, %s1630_s9 }
 0x327   : > { %1140 = vrot.lane.b32.xlu0 %v1109_v20, %s1630_s9  ;;  %1142 = vrot.lane.b32.xlu1 %v2562_v27, %s1630_s9  ;;  %v1413_v20 = vrot.slane %v2446_v60, 2 }
 0x329   : > { %v2683_v57 = vsel %vm653_vm2, %v1413_v20, %v1414_v34 }
 0x32b   : > { %1144 = vrot.lane.b32.xlu0 %v2568_v9, %s1630_s9  ;;  %1146 = vrot.lane.b32.xlu1 %v1111_v50, %s1630_s9 }
 0x32f   : > { %1183 = vrot.lane.b32.xlu0 %v2590_v23, %s1629_s7  ;;  %1185 = vrot.lane.b32.xlu1 %v2593_v41, %s1629_s7 }
 0x333   : > { %1187 = vrot.lane.b32.xlu0 %v1180_v14, %s1629_s7  ;;  %1189 = vrot.lane.b32.xlu1 %v2602_v62, %s1629_s7 }
 0x337   : > { %1191 = vrot.lane.b32.xlu0 %v2608_v53, %s1629_s7  ;;  %1193 = vrot.lane.b32.xlu1 %v1182_v48, %s1629_s7 }
 0x33b   : > { %1207 = vrot.lane.b32.xlu0 %v2590_v23, %s1630_s9  ;;  %1209 = vrot.lane.b32.xlu1 %v2593_v41, %s1630_s9 }
 0x33f   : > { %1211 = vrot.lane.b32.xlu0 %v1180_v14, %s1630_s9  ;;  %1365 = vrot.lane.b32.xlu1 %v2622_v24, %s1629_s7  ;;  %v1434_v14 = vrot.slane %v1287_v36, 2 }
 0x341   : > { %v1435_v19 = vsel %vm653_vm2, %v1432_v39, %v1434_v14 }
 0x343   : > { %1369 = vrot.lane.b32.xlu1 %v1362_v8, %s1629_s7  ;;  %1367 = vrot.lane.b32.xlu0 %v2638_v0, %s1629_s7 }
 0x347   : > { %1373 = vrot.lane.b32.xlu1 %v2647_v46, %s1629_s7  ;;  %1371 = vrot.lane.b32.xlu0 %v2650_v63, %s1629_s7 }
 0x34b   : > { %1389 = vrot.lane.b32.xlu1 %v2622_v24, %s1630_s9  ;;  %1375 = vrot.lane.b32.xlu0 %v1364_v33, %s1629_s7 }
 0x34f   : > { %1393 = vrot.lane.b32.xlu1 %v1362_v8, %s1630_s9  ;;  %1391 = vrot.lane.b32.xlu0 %v2638_v0, %s1630_s9 }
 0x353   : > { %1397 = vrot.lane.b32.xlu1 %v2647_v46, %s1630_s9  ;;  %1395 = vrot.lane.b32.xlu0 %v2650_v63, %s1630_s9 }
 0x357   : > { %1213 = vrot.lane.b32.xlu1 %v2602_v62, %s1630_s9  ;;  %1399 = vrot.lane.b32.xlu0 %v1364_v33, %s1630_s9 }
 0x359   : > { %v1039_v37 = vpop.permute.xlu0 %1038  ;;  %v1041_v38 = vpop.permute.xlu1 %1040 }
 0x35a   : > { %v1050_v56 = vsel %vm540_vm4, %v1039_v37, %v1041_v38 }
 0x35b   : > { %1217 = vrot.lane.b32.xlu1 %v1182_v48, %s1630_s9  ;;  %1215 = vrot.lane.b32.xlu0 %v2608_v53, %s1630_s9  ;;  %v1058_v45 = vadd.f32 %v1050_v56, %v2427_v61 }
 0x35d   : > { %v1043_v50 = vpop.permute.xlu0 %1042  ;;  %v1065_v55 = vpop.permute.xlu1 %1064 }
 0x35e   : > { %v1051_v5 = vsel %vm540_vm4, %v1041_v38, %v1043_v50 }
 0x35f   : > { %1438 = vrot.lane.b32.xlu1 %v2680_v58, %s1629_s7  ;;  %1436 = vrot.lane.b32.xlu0 %v2683_v57, %s1629_s7  ;;  %v1059_v52 = vadd.f32 %v1051_v5, %v2430_v11 }
 0x361   : > { %v1063_v30 = vpop.permute.xlu0 %1062  ;;  %v1292_v28 = vpop.permute.xlu1 %1291 }
 0x362   : > { %v1074_v48 = vsel %vm565_vm5, %v1063_v30, %v1065_v55 }
 0x363   : > { %v2694_v44 = vadd.f32 %v1074_v48, %v1058_v45  ;;  %1442 = vrot.lane.b32.xlu1 %v2692_v4, %s1629_s7  ;;  %1440 = vrot.lane.b32.xlu0 %v2488_v2, %s1629_s7 }
 0x365   : > { %v1067_v61 = vpop.permute.xlu0 %1066  ;;  %v1296_v26 = vpop.permute.xlu1 %1295 }
 0x366   : > { %v1075_v31 = vsel %vm565_vm5, %v1065_v55, %v1067_v61 }
 0x367   : > { %v2708_v35 = vadd.f32 %v1075_v31, %v1059_v52  ;;  %1446 = vrot.lane.b32.xlu1 %v1435_v19, %s1629_s7  ;;  %1444 = vrot.lane.b32.xlu0 %v2706_v1, %s1629_s7 }
 0x369   : > { %v1294_v7 = vpop.permute.xlu0 %1293  ;;  %v1316_v11 = vpop.permute.xlu1 %1315 }
 0x36a   : > { %v1303_v21 = vsel %vm540_vm4, %v1292_v28, %v1294_v7  ;;  %v1304_v8 = vsel %vm540_vm4, %v1294_v7, %v1296_v26 }
 0x36b   : > { %1462 = vrot.lane.b32.xlu1 %v2680_v58, %s1630_s9  ;;  %1460 = vrot.lane.b32.xlu0 %v2683_v57, %s1630_s9  ;;  %v1311_v40 = vmax.f32 %v2446_v60, %v1303_v21  ;;  %v1312_v39 = vmax.f32 %v2465_v12, %v1304_v8 }
 0x36d   : > { %v1318_v36 = vpop.permute.xlu0 %1317  ;;  %v1320_v49 = vpop.permute.xlu1 %1319 }
 0x36e   : > { %v1327_v33 = vsel %vm565_vm5, %v1316_v11, %v1318_v36  ;;  %v1328_v37 = vsel %vm565_vm5, %v1318_v36, %v1320_v49 }
 0x36f   : > { %v2723_v38 = vmax.f32 %v1311_v40, %v1327_v33  ;;  %v2725_v56 = vmax.f32 %v1312_v39, %v1328_v37  ;;  %1466 = vrot.lane.b32.xlu1 %v2692_v4, %s1630_s9  ;;  %1464 = vrot.lane.b32.xlu0 %v2488_v2, %s1630_s9 }
 0x371   : > { %v1047_v3 = vpop.permute.xlu0 %1046  ;;  %v1045_v60 = vpop.permute.xlu1 %1044  ;;  %v1355_v12 = vmax.f32 %v2723_v38, %v2622_v24  ;;  %v1356_v34 = vmax.f32 %v2725_v56, %v2638_v0 }
 0x372   : > { %v1052_v13 = vsel %vm540_vm4, %v1045_v60, %v1047_v3 }
 0x373   : > { %1470 = vrot.lane.b32.xlu1 %v1435_v19, %s1630_s9  ;;  %1468 = vrot.lane.b32.xlu0 %v2706_v1, %s1630_s9  ;;  %v1060_v2 = vadd.f32 %v1052_v13, %v2491_v32 }
 0x375   : > { %v1071_v20 = vpop.permute.xlu0 %1070  ;;  %v1049_v50 = vpop.permute.xlu1 %1048 }
 0x376   : > { %v1053_v55 = vsel %vm540_vm4, %v1047_v3, %v1049_v50 }
 0x377   : > { %v1061_v28 = vadd.f32 %v1053_v55, %v2494_v43 }
 0x379   : > { %v1298_v16 = vpop.permute.xlu0 %1297  ;;  %v1069_v5 = vpop.permute.xlu1 %1068 }
 0x37a   : > { %v1076_v45 = vsel %vm565_vm5, %v1069_v5, %v1071_v20 }
 0x37b   : > { %v2742_v30 = vadd.f32 %v1076_v45, %v1060_v2  ;;  %v1102_v45 = vadd.f32 %v2548_v18, %v2694_v44 }
 0x37d   : > { %v1302_v54 = vpop.permute.xlu0 %1301  ;;  %v1073_v14 = vpop.permute.xlu1 %1072 }
 0x37e   : > { %v1077_v48 = vsel %vm565_vm5, %v1071_v20, %v1073_v14 }
 0x37f   : > { %v2746_v52 = vadd.f32 %v1077_v48, %v1061_v28 }
 0x381   : > { %v1322_v61 = vpop.permute.xlu0 %1321  ;;  %v1300_v26 = vpop.permute.xlu1 %1299 }
 0x382   : > { %v1305_v31 = vsel %vm540_vm4, %v1298_v16, %v1300_v26  ;;  %v1306_v32 = vsel %vm540_vm4, %v1300_v26, %v1302_v54  ;;  %v1103_v26 = vadd.f32 %v2551_v59, %v2708_v35 }
 0x383   : > { %v1313_v19 = vmax.f32 %v2514_v6, %v1305_v31  ;;  %v1314_v7 = vmax.f32 %v2531_v10, %v1306_v32 }
 0x385   : > { %v1326_v11 = vpop.permute.xlu0 %1325  ;;  %v1324_v21 = vpop.permute.xlu1 %1323 }
 0x386   : > { %v1329_v43 = vsel %vm565_vm5, %v1322_v61, %v1324_v21  ;;  %v1330_v8 = vsel %vm565_vm5, %v1324_v21, %v1326_v11 }
 0x387   : > { %v2754_v40 = vmax.f32 %v1313_v19, %v1329_v43  ;;  %v2756_v39 = vmax.f32 %v1314_v7, %v1330_v8 }
 0x389   : > { %v1113_v36 = vpop.permute.xlu0 %1112  ;;  %v1115_v49 = vpop.permute.xlu1 %1114 }
 0x38a   : > { %v1124_v5 = vsel %vm540_vm4, %v1113_v36, %v1115_v49 }
 0x38b   : > { %v1132_v54 = vadd.f32 %v1124_v5, %v1102_v45 }
 0x38d   : > { %v1117_v33 = vpop.permute.xlu0 %1116  ;;  %v1119_v37 = vpop.permute.xlu1 %1118 }
 0x38e   : > { %v1125_v61 = vsel %vm540_vm4, %v1115_v49, %v1117_v33 }
 0x38f   : > { %v1133_v19 = vadd.f32 %v1125_v61, %v1103_v26 }
 0x391   : > { %v1121_v3 = vpop.permute.xlu0 %1120  ;;  %v1123_v60 = vpop.permute.xlu1 %1122 }
 0x395   : > { %v1137_v13 = vpop.permute.xlu0 %1136  ;;  %v1139_v6 = vpop.permute.xlu1 %1138 }
 0x396   : > { %v1148_v28 = vsel %vm565_vm5, %v1137_v13, %v1139_v6 }
 0x397   : > { %v1156_v31 = vadd.f32 %v1148_v28, %v1132_v54 }
 0x399   : > { %v1141_v20 = vpop.permute.xlu0 %1140  ;;  %v1143_v10 = vpop.permute.xlu1 %1142  ;;  %v1174_v18 = vadd.f32 %v2590_v23, %v1156_v31 }
 0x39a   : > { %v1149_v32 = vsel %vm565_vm5, %v1139_v6, %v1141_v20 }
 0x39b   : > { %v1157_v43 = vadd.f32 %v1149_v32, %v1133_v19  ;;  %v1127_v19 = vsel %vm540_vm4, %v1121_v3, %v1123_v60 }
 0x39d   : > { %v1145_v50 = vpop.permute.xlu0 %1144  ;;  %v1147_v55 = vpop.permute.xlu1 %1146  ;;  %v1175_v35 = vadd.f32 %v2593_v41, %v1157_v43 }
 0x39e   : > { %v1151_v43 = vsel %vm565_vm5, %v1145_v50, %v1147_v55 }
 0x3a1   : > { %v1184_v2 = vpop.permute.xlu0 %1183  ;;  %v1186_v16 = vpop.permute.xlu1 %1185 }
 0x3a2   : > { %v1195_v21 = vsel %vm540_vm4, %v1184_v2, %v1186_v16 }
 0x3a3   : > { %v1203_v44 = vadd.f32 %v1195_v21, %v1174_v18  ;;  %v1105_v21 = vadd.f32 %v2568_v9, %v2746_v52 }
 0x3a5   : > { %v1188_v14 = vpop.permute.xlu0 %1187  ;;  %v1190_v48 = vpop.permute.xlu1 %1189 }
 0x3a6   : > { %v1196_v49 = vsel %vm540_vm4, %v1186_v16, %v1188_v14 }
 0x3a7   : > { %v1204_v13 = vadd.f32 %v1196_v49, %v1175_v35 }
 0x3a9   : > { %v1192_v7 = vpop.permute.xlu0 %1191  ;;  %v1194_v11 = vpop.permute.xlu1 %1193 }
 0x3aa   : > { %v1198_v60 = vsel %vm540_vm4, %v1192_v7, %v1194_v11 }
 0x3ad   : > { %v1208_v8 = vpop.permute.xlu0 %1207  ;;  %v1210_v36 = vpop.permute.xlu1 %1209 }
 0x3ae   : > { %v1219_v59 = vsel %vm565_vm5, %v1208_v8, %v1210_v36 }
 0x3af   : > { %v1227_v33 = vadd.f32 %v1219_v59, %v1203_v44  ;;  %v1135_v44 = vadd.f32 %v1127_v19, %v1105_v21 }
 0x3b1   : > { %v1231_v6 = vmul.f32 %v1227_v33, %v2305_v25  ;;  %v1212_v20 = vpop.permute.xlu0 %1211  ;;  %v1366_v2 = vpop.permute.xlu1 %1365  ;;  %v1159_v59 = vadd.f32 %v1151_v43, %v1135_v44 }
 0x3b2   : > { %v1220_v5 = vsel %vm565_vm5, %v1210_v36, %v1212_v20 }
 0x3b3   : > { %v2774_v23 = vadd.f32 %v1231_v6, %v2331_v15  ;;  %v1228_v45 = vadd.f32 %v1220_v5, %v1204_v13  ;;  %v1126_v15 = vsel %vm540_vm4, %v1119_v37, %v1121_v3  ;;  %v1197_v3 = vsel %vm540_vm4, %v1190_v48, %v1192_v7 }
 0x3b4   : > { %v1177_v9 = vadd.f32 %v2608_v53, %v1159_v59 }
 0x3b5   : > { %1593 = vst [vmem:[%s2310_s16 + $0x40] sm:$0xff] %v2774_v23  ;;  %v1232_v16 = vmul.f32 %v1228_v45, %v2302_v22  ;;  %v1368_v28 = vpop.permute.xlu0 %1367  ;;  %v1370_v54 = vpop.permute.xlu1 %1369  ;;  %v1104_v22 = vadd.f32 %v2562_v27, %v2742_v30 }
 0x3b6   : > { %v1206_v52 = vadd.f32 %v1198_v60, %v1177_v9  ;;  %v1377_v53 = vsel %vm540_vm4, %v1366_v2, %v1368_v28 }
 0x3b7   : > { %v2780_v41 = vadd.f32 %v1232_v16, %v2328_v47  ;;  %v1150_v47 = vsel %vm565_vm5, %v1143_v10, %v1145_v50  ;;  %v1134_v18 = vadd.f32 %v1126_v15, %v1104_v22  ;;  %v1385_v16 = vmax.f32 %v1355_v12, %v1377_v53 }
 0x3b8   : > { %v1357_v12 = vmax.f32 %v2754_v40, %v2650_v63 }
 0x3b9   : > { %1594 = vst [vmem:[%s2310_s16 + $0x48] sm:$0xff] %v2780_v41  ;;  %v1372_v25 = vpop.permute.xlu0 %1371  ;;  %v1374_v14 = vpop.permute.xlu1 %1373  ;;  %v1158_v49 = vadd.f32 %v1150_v47, %v1134_v18 }
 0x3bb   : > { %v1176_v27 = vadd.f32 %v2602_v62, %v1158_v49 }
 0x3bd   : > { %v1376_v61 = vpop.permute.xlu0 %1375  ;;  %v1390_v26 = vpop.permute.xlu1 %1389  ;;  %v1205_v30 = vadd.f32 %v1197_v3, %v1176_v27 }
 0x3be   : > { %v1380_v24 = vsel %vm540_vm4, %v1374_v14, %v1376_v61 }
 0x3c1   : > { %v1392_v31 = vpop.permute.xlu0 %1391  ;;  %v1394_v32 = vpop.permute.xlu1 %1393 }
 0x3c2   : > { %v1401_v45 = vsel %vm565_vm5, %v1390_v26, %v1392_v31  ;;  %v1402_v22 = vsel %vm565_vm5, %v1392_v31, %v1394_v32  ;;  %v1379_v26 = vsel %vm540_vm4, %v1372_v25, %v1374_v14 }
 0x3c3   : > { %v1409_v19 = vmax.f32 %v1385_v16, %v1401_v45 }
 0x3c5   : > { %v1396_v8 = vpop.permute.xlu0 %1395  ;;  %v1398_v36 = vpop.permute.xlu1 %1397  ;;  %v1427_v31 = vmax.f32 %v1409_v19, %v2683_v57 }
 0x3c6   : > { %v1403_v0 = vsel %vm565_vm5, %v1396_v8, %v1398_v36 }
 0x3c9   : > { %v1400_v35 = vpop.permute.xlu0 %1399  ;;  %v1214_v37 = vpop.permute.xlu1 %1213 }
 0x3ca   : > { %v1404_v56 = vsel %vm565_vm5, %v1398_v36, %v1400_v35 }
 0x3cd   : > { %v1216_v10 = vpop.permute.xlu0 %1215  ;;  %v1218_v50 = vpop.permute.xlu1 %1217 }
 0x3ce   : > { %v1221_v55 = vsel %vm565_vm5, %v1214_v37, %v1216_v10  ;;  %v1222_v33 = vsel %vm565_vm5, %v1216_v10, %v1218_v50 }
 0x3cf   : > { %v1229_v13 = vadd.f32 %v1221_v55, %v1205_v30  ;;  %v1230_v6 = vadd.f32 %v1222_v33, %v1206_v52 }
 0x3d1   : > { %v1233_v48 = vmul.f32 %v1229_v13, %v2292_v29  ;;  %v1234_v7 = vmul.f32 %v1230_v6, %v2320_v17  ;;  %v1437_v11 = vpop.permute.xlu0 %1436  ;;  %v1439_v62 = vpop.permute.xlu1 %1438  ;;  %v1378_v17 = vsel %vm540_vm4, %v1368_v28, %v1370_v54  ;;  %v1358_v28 = vmax.f32 %v2756_v39, %v2647_v46 }
 0x3d2   : > { %v1448_v38 = vsel %vm540_vm4, %v1437_v11, %v1439_v62 }
 0x3d3   : > { %v1237_v20 = vadd.f32 %v1233_v48, %v2318_v42  ;;  %v1238_v5 = vadd.f32 %v1234_v7, %v2342_v51  ;;  %v1386_v42 = vmax.f32 %v1356_v34, %v1378_v17  ;;  %v1387_v34 = vmax.f32 %v1357_v12, %v1379_v26 }
 0x3d4   : > { %v1388_v32 = vmax.f32 %v1358_v28, %v1380_v24  ;;  %v1456_v25 = vmax.f32 %v1427_v31, %v1448_v38 }
 0x3d5   : > { %1595 = vst [vmem:[%s2310_s16 + $0x50] sm:$0xff] %v1237_v20  ;;  %1596 = vst [vmem:[%s2310_s16 + $0x58] sm:$0xff] %v1238_v5  ;;  %v1441_v15 = vpop.permute.xlu0 %1440  ;;  %v1443_v29 = vpop.permute.xlu1 %1442  ;;  %v1410_v54 = vmax.f32 %v1386_v42, %v1402_v22  ;;  %v1411_v63 = vmax.f32 %v1387_v34, %v1403_v0 }
 0x3d6   : > { %v1449_v61 = vsel %vm540_vm4, %v1439_v62, %v1441_v15  ;;  %v1412_v40 = vmax.f32 %v1388_v32, %v1404_v56 }
 0x3d7   : > { %v1428_v46 = vmax.f32 %v1410_v54, %v2680_v58  ;;  %v1429_v59 = vmax.f32 %v1411_v63, %v2692_v4 }
 0x3d8   : > { %v1430_v35 = vmax.f32 %v1412_v40, %v2706_v1 }
 0x3d9   : > { %v1445_v51 = vpop.permute.xlu0 %1444  ;;  %v1447_v2 = vpop.permute.xlu1 %1446  ;;  %v1457_v57 = vmax.f32 %v1428_v46, %v1449_v61 }
 0x3da   : > { %v1450_v8 = vsel %vm540_vm4, %v1443_v29, %v1445_v51  ;;  %v1451_v36 = vsel %vm540_vm4, %v1445_v51, %v1447_v2 }
 0x3db   : > { %v1458_v58 = vmax.f32 %v1429_v59, %v1450_v8  ;;  %v1459_v60 = vmax.f32 %v1430_v35, %v1451_v36 }
 0x3dd   : > { %v1461_v21 = vpop.permute.xlu0 %1460  ;;  %v1463_v14 = vpop.permute.xlu1 %1462 }
 0x3de   : > { %v1472_v47 = vsel %vm565_vm5, %v1461_v21, %v1463_v14 }
 0x3df   : > { %v1480_v39 = vmax.f32 %v1456_v25, %v1472_v47 }
 0x3e1   : > { %v1484_v43 = vmul.f32 0.999995, %v1480_v39  ;;  %v1465_v18 = vpop.permute.xlu0 %1464  ;;  %v1467_v44 = vpop.permute.xlu1 %1466 }
 0x3e2   : > { %v1473_v49 = vsel %vm565_vm5, %v1463_v14, %v1465_v18 }
 0x3e3   : > { %v1488_v37 = vadd.f32 %v1484_v43, %v2774_v23  ;;  %v1481_v3 = vmax.f32 %v1457_v57, %v1473_v49 }
 0x3e5   : > { %1597 = vst [vmem:[%s2310_s16 + $0x60] sm:$0xff] %v1488_v37  ;;  %v1485_v27 = vmul.f32 0.999995, %v1481_v3  ;;  %v1469_v9 = vpop.permute.xlu0 %1468  ;;  %v1471_v30 = vpop.permute.xlu1 %1470 }
 0x3e6   : > { %v1474_v52 = vsel %vm565_vm5, %v1467_v44, %v1469_v9  ;;  %v1475_v10 = vsel %vm565_vm5, %v1469_v9, %v1471_v30 }
 0x3e7   : > { %v1489_v50 = vadd.f32 %v1485_v27, %v2780_v41  ;;  %v1482_v4 = vmax.f32 %v1458_v58, %v1474_v52  ;;  %v1483_v55 = vmax.f32 %v1459_v60, %v1475_v10 }
 0x3e9   : > { %1598 = vst [vmem:[%s2310_s16 + $0x68] sm:$0xff] %v1489_v50  ;;  %v1486_v1 = vmul.f32 0.999995, %v1482_v4  ;;  %v1487_v23 = vmul.f32 0.999995, %v1483_v55 }
 0x3eb   : > { %v1490_v33 = vadd.f32 %v1486_v1, %v1237_v20  ;;  %v1491_v13 = vadd.f32 %v1487_v23, %v1238_v5 }
 0x3ed   : > { %1599 = vst [vmem:[%s2310_s16 + $0x70] sm:$0xff] %v1490_v33  ;;  %1600 = vst [vmem:[%s2310_s16 + $0x78] sm:$0xff] %v1491_v13 }
 0x3ee PF: > { %s14_s15 = sadd.s32 1, %s1625_s15  }
 0x3ef   : > { %p11_p4 = scmp.ge.s32.totalorder %s14_s15, 4  }
 0x3f1   :  { %13 = sbr.rel (!%p11_p4) target bundleno = 1 (0x1), region = 72 }

</bundles_post_ra>
